<compile_context>
chip_gen: v5e
topology: v5e:2x2
jax: 0.10.0
libtpu: 0.0.40
codegen_flags: <defaults>
</compile_context>

<pallas_src>
import functools

import numpy as np
import jax
import jax.numpy as jnp
from jax.experimental import pallas as pl
from jax.experimental.pallas import tpu as pltpu

_VMEM = pl.BlockSpec(memory_space=pltpu.MemorySpace.VMEM)
_ANY = pl.BlockSpec(memory_space=pl.ANY)

_K1 = 7 * 7 * 4          # conv1 im2col contraction (196)
_K1_PAD = 256            # padded to 2 lane tiles
_K3 = 3 * 3 * 64         # 3x3 conv im2col contraction (576)


# ---------------------------------------------------------------------------
# The single fused kernel
# ---------------------------------------------------------------------------
def _resnet_kernel(lhs1_ref, w1_ref, bias_ref, wconv_hbm, whead_hbm,
                   out_ref, wconv_ref, whead_ref, sem_ref, *, n_batch):
    f32 = jnp.float32
    bf16 = jnp.bfloat16
    nb = n_batch
    onb = 8 * nb                         # rows per ox-block of the conv1 output

    # Prefetch the late-stage weights HBM->VMEM; the DMA overlaps conv1+maxpool.
    cp_conv = pltpu.make_async_copy(wconv_hbm, wconv_ref, sem_ref.at[0])
    cp_head = pltpu.make_async_copy(whead_hbm, whead_ref, sem_ref.at[1])
    cp_conv.start()
    cp_head.start()

    # ---- conv1 (7x7, s=2, p=3, folded BN) + relu: one MXU matmul ------------
    # lhs rows are ordered (ox, oy, n); columns = flattened 7x7x4 patch (padded).
    y1 = jnp.dot(lhs1_ref[...], w1_ref[...], preferred_element_type=f32)
    y1 = jnp.maximum(y1 + bias_ref[0:1, 0:64], 0.0)             # (64*nb, 64)

    # ---- maxpool 3x3, s=2, p=1 on the 8x8 map, fully vectorized -------------
    # horizontal pass (over ox): each ox is a contiguous (8*nb)-row slab.
    def oxblk(ox):
        return y1[ox * onb:(ox + 1) * onb, :]

    cols = []
    for x in range(4):
        m = jnp.maximum(oxblk(2 * x), oxblk(2 * x + 1))
        if x > 0:                                   # ox = 2x-1 (clipped at x=0)
            m = jnp.maximum(m, oxblk(2 * x - 1))
        cols.append(m)
    vstage = jnp.concatenate(cols, axis=1)          # (8*nb, 256), rows=(oy, n)

    # vertical pass (over oy): each oy is a contiguous nb-row slab.
    rows = []
    for y in range(4):
        m = jnp.maximum(vstage[2 * y * nb:(2 * y + 1) * nb, :],
                        vstage[(2 * y + 1) * nb:(2 * y + 2) * nb, :])
        if y > 0:                                   # oy = 2y-1 (clipped at y=0)
            m = jnp.maximum(m, vstage[(2 * y - 1) * nb:2 * y * nb, :])
        rows.append(m)
    act = jnp.concatenate(rows, axis=0)             # (4*nb, 256), rows=(y, n), lanes=(x, c)

    # Layer1 / fc / head weights are needed from here on.
    cp_conv.wait()
    cp_head.wait()

    # ---- layer1: two BasicBlocks; each 3x3 conv = one dense im2col matmul ---
    def conv3x3(x_act, w_rows, b_row):
        # x_act: (4*nb, 256) rows=(y, n), lanes=(x, c).  Dense weight (576, 64).
        z64 = jnp.zeros((4 * nb, 64), f32)
        zrow = jnp.zeros((nb, 384), f32)
        p1 = jnp.concatenate([z64, x_act, z64], axis=1)      # input rows y   (x zero-padded)
        p0 = jnp.concatenate([zrow, p1[:3 * nb, :]], axis=0)  # input rows y-1
        p2 = jnp.concatenate([p1[nb:, :], zrow], axis=0)      # input rows y+1
        lhs = jnp.concatenate(
            [jnp.concatenate([p0[:, 64 * x:64 * x + 192],
                              p1[:, 64 * x:64 * x + 192],
                              p2[:, 64 * x:64 * x + 192]], axis=1)
             for x in range(4)], axis=0).astype(bf16)        # (16*nb, 576), rows=(x, y, n)
        o = jnp.dot(lhs, w_rows, preferred_element_type=f32) + b_row
        return jnp.concatenate(
            [o[4 * nb * x:4 * nb * (x + 1), :] for x in range(4)], axis=1)

    for blk in range(2):
        off = 2 * blk * _K3
        res = act                                            # identity shortcut (f32)
        h = jnp.maximum(
            conv3x3(act, wconv_ref[off:off + _K3, :],
                    bias_ref[1 + 2 * blk:2 + 2 * blk, 0:64]), 0.0)
        act = jnp.maximum(
            conv3x3(h, wconv_ref[off + _K3:off + 2 * _K3, :],
                    bias_ref[2 + 2 * blk:3 + 2 * blk, 0:64]) + res, 0.0)

    # ---- adaptive average pool to 1x1 (mean over 4x4) ------------------------
    s = act[:, 0:64] + act[:, 64:128] + act[:, 128:192] + act[:, 192:256]
    feat = (s[0:nb, :] + s[nb:2 * nb, :] + s[2 * nb:3 * nb, :]
            + s[3 * nb:4 * nb, :]) * (1.0 / 16.0)            # (nb, 64)

    # ---- fc + TransformLayer (relu -> linear -> tanh), batched over N -------
    z = jnp.dot(feat.astype(bf16), whead_ref[0:64, :],
                preferred_element_type=f32) + bias_ref[5:6, 0:128]
    z = jnp.maximum(z, 0.0)
    o = jnp.dot(z.astype(bf16), whead_ref[64:192, :],
                preferred_element_type=f32) + bias_ref[6:7, 0:128]
    out_ref[...] = jnp.tanh(o)                               # (nb, 128), lanes >= 8 are 0


# ---------------------------------------------------------------------------
# Forward wrapper (single pallas_call)
# ---------------------------------------------------------------------------
def resnet_forward(prep, x_nchw, padding_mask=None, out_dim=8):
    # padding_mask unused (matches the reference forward).
    del padding_mask
    w1, bias_slab, wconv, whead = prep
    n = x_nchw.shape[0]

    # conv1 im2col (tiny activation prep, done once in XLA; weights stay dense).
    # Rows are ordered (ox, oy, n) so the in-kernel maxpool is pure block maxes.
    # TODO(synk): move this im2col into the kernel if batch size ever grows.
    x = jnp.transpose(x_nchw, (0, 2, 3, 1)).astype(jnp.float32)     # NCHW -> NHWC
    xp = jnp.pad(x, ((0, 0), (3, 3), (3, 3), (0, 0)))               # (N, 22, 22, 4)
    patches = jnp.stack(
        [xp[:, dy:dy + 16:2, dx:dx + 16:2, :]
         for dy in range(7) for dx in range(7)], axis=3)            # (N, 8, 8, 49, 4)
    lhs = jnp.transpose(patches, (2, 1, 0, 3, 4)).reshape(n * 64, _K1)
    lhs = jnp.pad(lhs, ((0, 0), (0, _K1_PAD - _K1))).astype(jnp.bfloat16)

    kernel = functools.partial(_resnet_kernel, n_batch=n)
    out = pl.pallas_call(
        kernel,
        out_shape=jax.ShapeDtypeStruct((n, 128), jnp.float32),
        in_specs=[_VMEM, _VMEM, _VMEM, _ANY, _ANY],
        out_specs=_VMEM,
        scratch_shapes=[
            pltpu.VMEM(wconv.shape, jnp.bfloat16),     # layer1 conv weights
            pltpu.VMEM(whead.shape, jnp.bfloat16),     # fc + head weights
            pltpu.SemaphoreType.DMA((2,)),             # prefetch semaphores
        ],
    )(lhs, w1, bias_slab, wconv, whead)
    return out[:, :out_dim]


# ---------------------------------------------------------------------------
# One-time (host-side) parameter preparation
# ---------------------------------------------------------------------------
def prepare_params(p):
    """Fold eval-mode BN into the conv weights/biases, keep every conv weight
    DENSE (im2col layout), pad fc/head to 128 lanes, and pack everything into
    four arrays so the kernel sees few, large DMAs."""
    def np32(a):
        return np.asarray(a, np.float32)

    # conv1: (7,7,4,64) * BN scale -> dense (196,64) -> K padded to (256,64).
    w1 = np32(p["conv1_w"]) * np32(p["bn1_s"])[None, None, None, :]
    w1 = np.pad(w1.reshape(_K1, 64), ((0, _K1_PAD - _K1), (0, 0)))

    # layer1: 4 convs of (3,3,64,64) -> dense (576,64) each, stacked -> (2304,64).
    conv_blocks, conv_biases = [], []
    for blk in ("blk1", "blk2"):
        for i in (1, 2):
            w = np32(p[f"{blk}_w{i}"]) * np32(p[f"{blk}_s{i}"])[None, None, None, :]
            conv_blocks.append(w.reshape(_K3, 64))
            conv_biases.append(np32(p[f"{blk}_bb{i}"]))
    wconv = np.concatenate(conv_blocks, axis=0)                    # (2304, 64)

    # fc (64, d_model) and head (d_model, out_dim), zero-padded to 128 lanes,
    # stacked along rows -> (192, 128).
    d_model = int(p["fc_w"].shape[1])
    out_dim = int(p["head_w"].shape[1])
    fcw = np.zeros((64, 128), np.float32)
    fcw[:, :d_model] = np32(p["fc_w"])
    hdw = np.zeros((128, 128), np.float32)
    hdw[:d_model, :out_dim] = np32(p["head_w"])
    whead = np.concatenate([fcw, hdw], axis=0)                     # (192, 128)

    # One f32 bias slab (8, 256): row0=conv1/bn1, rows1-4=layer1 convs,
    # row5=fc, row6=head (rows padded to 8, lanes to 256).
    bias = np.zeros((8, 256), np.float32)
    bias[0, :64] = np32(p["bn1_b"])
    for i, b in enumerate(conv_biases):
        bias[1 + i, :64] = b
    bias[5, :d_model] = np32(p["fc_b"])
    bias[6, :out_dim] = np32(p["head_b"])

    return (jnp.asarray(w1, jnp.bfloat16),
            jnp.asarray(bias, jnp.float32),
            jnp.asarray(wconv, jnp.bfloat16),
            jnp.asarray(whead, jnp.bfloat16))


# ---------------------------------------------------------------------------
# Parameters (folded-BN parameterization, matches the reference architecture)
# ---------------------------------------------------------------------------
def init_params(key, num_channels=4, d_model=32, output_shape=8):
    ks = jax.random.split(key, 20)

    def rn(k, shape, scale):
        return scale * jax.random.normal(k, shape, jnp.float32)

    p = {}
    p["conv1_w"] = rn(ks[0], (7, 7, num_channels, 64), 0.05)
    p["bn1_s"] = 1.0 + rn(ks[1], (64,), 0.01)        # folded BN scale
    p["bn1_b"] = rn(ks[2], (64,), 0.01)              # folded BN bias
    for i, blk in enumerate(["blk1", "blk2"]):
        base = 3 + i * 6
        p[f"{blk}_w1"] = rn(ks[base + 0], (3, 3, 64, 64), 0.04)
        p[f"{blk}_s1"] = 1.0 + rn(ks[base + 1], (64,), 0.01)
        p[f"{blk}_bb1"] = rn(ks[base + 2], (64,), 0.01)
        p[f"{blk}_w2"] = rn(ks[base + 3], (3, 3, 64, 64), 0.04)
        p[f"{blk}_s2"] = 1.0 + rn(ks[base + 4], (64,), 0.01)
        p[f"{blk}_bb2"] = rn(ks[base + 5], (64,), 0.01)
    p["fc_w"] = rn(ks[15], (64, d_model), 0.1)
    p["fc_b"] = rn(ks[16], (d_model,), 0.01)
    p["head_w"] = rn(ks[17], (d_model, output_shape), 0.1)
    p["head_b"] = rn(ks[18], (output_shape,), 0.01)
    return p


if __name__ == "__main__":
    key = jax.random.PRNGKey(0)
    k_param, k_x = jax.random.split(key)

    # network_config: input_shape=(4,16,16), num_layers=1, d_model=32,
    # output_shape=8, act_fn='tanh'
    params = init_params(k_param, num_channels=4, d_model=32, output_shape=8)
    prep = prepare_params(params)                          # one-time weight prep
    x = jax.random.normal(k_x, (2, 4, 16, 16), jnp.float32)    # NCHW like PyTorch

    out = jax.jit(resnet_forward)(prep, x)
    out = jax.block_until_ready(out)
    assert out.shape == (2, 8), out.shape
    assert out.dtype == jnp.float32
    assert bool(jnp.all(jnp.isfinite(out)))
    print("KERNEL_OK")
</pallas_src>

<mosaic_0001>
module attributes {stable_mosaic.version = 11 : i64} {
  func.func @_resnet_kernel(%arg0: memref<128x256xbf16, #tpu.memory_space<vmem>>, %arg1: memref<256x64xbf16, #tpu.memory_space<vmem>>, %arg2: memref<8x256xf32, #tpu.memory_space<vmem>>, %arg3: memref<2304x64xbf16, #tpu.memory_space<any>>, %arg4: memref<192x128xbf16, #tpu.memory_space<any>>, %arg5: memref<2x128xf32, #tpu.memory_space<vmem>>, %arg6: memref<2304x64xbf16, #tpu.memory_space<vmem>>, %arg7: memref<192x128xbf16, #tpu.memory_space<vmem>>, %arg8: memref<2x!tpu.dma_semaphore, #tpu.memory_space<semaphore_mem>>) attributes {dimension_semantics = [], scalar_prefetch = 0 : i64, scratch_operands = 3 : i64, tpu.core_type = #tpu.core_type<tc>} {
    %c0_i32 = arith.constant 0 : i32
    %0 = tpu.memref_slice %arg8[%c0_i32] : memref<2x!tpu.dma_semaphore, #tpu.memory_space<semaphore_mem>> -> memref<1x!tpu.dma_semaphore, #tpu.memory_space<semaphore_mem>>
    %1 = tpu.memref_squeeze %0 : memref<1x!tpu.dma_semaphore, #tpu.memory_space<semaphore_mem>> -> memref<!tpu.dma_semaphore, #tpu.memory_space<semaphore_mem>>
    tpu.enqueue_dma source(%arg3 : memref<2304x64xbf16, #tpu.memory_space<any>>) target(%arg6 : memref<2304x64xbf16, #tpu.memory_space<vmem>>) target_semaphore(%1 : memref<!tpu.dma_semaphore, #tpu.memory_space<semaphore_mem>>)
    %c1_i32 = arith.constant 1 : i32
    %2 = tpu.memref_slice %arg8[%c1_i32] : memref<2x!tpu.dma_semaphore, #tpu.memory_space<semaphore_mem>> -> memref<1x!tpu.dma_semaphore, #tpu.memory_space<semaphore_mem>>
    %3 = tpu.memref_squeeze %2 : memref<1x!tpu.dma_semaphore, #tpu.memory_space<semaphore_mem>> -> memref<!tpu.dma_semaphore, #tpu.memory_space<semaphore_mem>>
    tpu.enqueue_dma source(%arg4 : memref<192x128xbf16, #tpu.memory_space<any>>) target(%arg7 : memref<192x128xbf16, #tpu.memory_space<vmem>>) target_semaphore(%3 : memref<!tpu.dma_semaphore, #tpu.memory_space<semaphore_mem>>)
    %c0 = arith.constant 0 : index
    %c0_0 = arith.constant 0 : index
    %4 = vector.load %arg0[%c0, %c0_0] : memref<128x256xbf16, #tpu.memory_space<vmem>>, vector<128x256xbf16>
    %c0_1 = arith.constant 0 : index
    %c0_2 = arith.constant 0 : index
    %5 = vector.load %arg1[%c0_1, %c0_2] : memref<256x64xbf16, #tpu.memory_space<vmem>>, vector<256x64xbf16>
    %cst = arith.constant dense<0.000000e+00> : vector<128x64xf32>
    %6 = tpu.matmul %4, %5, %cst {dimension_numbers = #tpu.dot_dimension_numbers<[1], [0], [0], [1], [0, 0, 1, 1], [], []>} : vector<128x256xbf16>, vector<256x64xbf16>, vector<128x64xf32> -> vector<128x64xf32>
    %c0_3 = arith.constant 0 : index
    %c0_4 = arith.constant 0 : index
    %7 = vector.load %arg2[%c0_3, %c0_4] : memref<8x256xf32, #tpu.memory_space<vmem>>, vector<1x64xf32>
    %8 = vector.broadcast %7 : vector<1x64xf32> to vector<128x64xf32>
    %9 = arith.addf %6, %8 : vector<128x64xf32>
    %cst_5 = arith.constant 0.000000e+00 : f32
    %10 = vector.broadcast %cst_5 : f32 to vector<128x64xf32>
    %11 = arith.maximumf %9, %10 : vector<128x64xf32>
    %12 = vector.extract_strided_slice %11 {offsets = [0, 0], sizes = [16, 64], strides = [1, 1]} : vector<128x64xf32> to vector<16x64xf32>
    %13 = vector.extract_strided_slice %11 {offsets = [16, 0], sizes = [16, 64], strides = [1, 1]} : vector<128x64xf32> to vector<16x64xf32>
    %14 = arith.maximumf %12, %13 : vector<16x64xf32>
    %15 = vector.extract_strided_slice %11 {offsets = [32, 0], sizes = [16, 64], strides = [1, 1]} : vector<128x64xf32> to vector<16x64xf32>
    %16 = vector.extract_strided_slice %11 {offsets = [48, 0], sizes = [16, 64], strides = [1, 1]} : vector<128x64xf32> to vector<16x64xf32>
    %17 = arith.maximumf %15, %16 : vector<16x64xf32>
    %18 = vector.extract_strided_slice %11 {offsets = [16, 0], sizes = [16, 64], strides = [1, 1]} : vector<128x64xf32> to vector<16x64xf32>
    %19 = arith.maximumf %17, %18 : vector<16x64xf32>
    %20 = vector.extract_strided_slice %11 {offsets = [64, 0], sizes = [16, 64], strides = [1, 1]} : vector<128x64xf32> to vector<16x64xf32>
    %21 = vector.extract_strided_slice %11 {offsets = [80, 0], sizes = [16, 64], strides = [1, 1]} : vector<128x64xf32> to vector<16x64xf32>
    %22 = arith.maximumf %20, %21 : vector<16x64xf32>
    %23 = vector.extract_strided_slice %11 {offsets = [48, 0], sizes = [16, 64], strides = [1, 1]} : vector<128x64xf32> to vector<16x64xf32>
    %24 = arith.maximumf %22, %23 : vector<16x64xf32>
    %25 = vector.extract_strided_slice %11 {offsets = [96, 0], sizes = [16, 64], strides = [1, 1]} : vector<128x64xf32> to vector<16x64xf32>
    %26 = vector.extract_strided_slice %11 {offsets = [112, 0], sizes = [16, 64], strides = [1, 1]} : vector<128x64xf32> to vector<16x64xf32>
    %27 = arith.maximumf %25, %26 : vector<16x64xf32>
    %28 = vector.extract_strided_slice %11 {offsets = [80, 0], sizes = [16, 64], strides = [1, 1]} : vector<128x64xf32> to vector<16x64xf32>
    %29 = arith.maximumf %27, %28 : vector<16x64xf32>
    %30 = tpu.concatenate %14, %19, %24, %29 in 1 : vector<16x64xf32>, vector<16x64xf32>, vector<16x64xf32>, vector<16x64xf32> -> vector<16x256xf32>
    %31 = vector.extract_strided_slice %30 {offsets = [0, 0], sizes = [2, 256], strides = [1, 1]} : vector<16x256xf32> to vector<2x256xf32>
    %32 = vector.extract_strided_slice %30 {offsets = [2, 0], sizes = [2, 256], strides = [1, 1]} : vector<16x256xf32> to vector<2x256xf32>
    %33 = arith.maximumf %31, %32 : vector<2x256xf32>
    %34 = vector.extract_strided_slice %30 {offsets = [4, 0], sizes = [2, 256], strides = [1, 1]} : vector<16x256xf32> to vector<2x256xf32>
    %35 = vector.extract_strided_slice %30 {offsets = [6, 0], sizes = [2, 256], strides = [1, 1]} : vector<16x256xf32> to vector<2x256xf32>
    %36 = arith.maximumf %34, %35 : vector<2x256xf32>
    %37 = vector.extract_strided_slice %30 {offsets = [2, 0], sizes = [2, 256], strides = [1, 1]} : vector<16x256xf32> to vector<2x256xf32>
    %38 = arith.maximumf %36, %37 : vector<2x256xf32>
    %39 = vector.extract_strided_slice %30 {offsets = [8, 0], sizes = [2, 256], strides = [1, 1]} : vector<16x256xf32> to vector<2x256xf32>
    %40 = vector.extract_strided_slice %30 {offsets = [10, 0], sizes = [2, 256], strides = [1, 1]} : vector<16x256xf32> to vector<2x256xf32>
    %41 = arith.maximumf %39, %40 : vector<2x256xf32>
    %42 = vector.extract_strided_slice %30 {offsets = [6, 0], sizes = [2, 256], strides = [1, 1]} : vector<16x256xf32> to vector<2x256xf32>
    %43 = arith.maximumf %41, %42 : vector<2x256xf32>
    %44 = vector.extract_strided_slice %30 {offsets = [12, 0], sizes = [2, 256], strides = [1, 1]} : vector<16x256xf32> to vector<2x256xf32>
    %45 = vector.extract_strided_slice %30 {offsets = [14, 0], sizes = [2, 256], strides = [1, 1]} : vector<16x256xf32> to vector<2x256xf32>
    %46 = arith.maximumf %44, %45 : vector<2x256xf32>
    %47 = vector.extract_strided_slice %30 {offsets = [10, 0], sizes = [2, 256], strides = [1, 1]} : vector<16x256xf32> to vector<2x256xf32>
    %48 = arith.maximumf %46, %47 : vector<2x256xf32>
    %49 = tpu.concatenate %33, %38, %43, %48 in 0 : vector<2x256xf32>, vector<2x256xf32>, vector<2x256xf32>, vector<2x256xf32> -> vector<8x256xf32>
    %c0_i32_6 = arith.constant 0 : i32
    %50 = tpu.memref_slice %arg8[%c0_i32_6] : memref<2x!tpu.dma_semaphore, #tpu.memory_space<semaphore_mem>> -> memref<1x!tpu.dma_semaphore, #tpu.memory_space<semaphore_mem>>
    %51 = tpu.memref_squeeze %50 : memref<1x!tpu.dma_semaphore, #tpu.memory_space<semaphore_mem>> -> memref<!tpu.dma_semaphore, #tpu.memory_space<semaphore_mem>>
    tpu.wait_dma2 semaphore(%51 : memref<!tpu.dma_semaphore, #tpu.memory_space<semaphore_mem>>) src(%arg3 : memref<2304x64xbf16, #tpu.memory_space<any>>) dst(%arg6 : memref<2304x64xbf16, #tpu.memory_space<vmem>>)
    %c1_i32_7 = arith.constant 1 : i32
    %52 = tpu.memref_slice %arg8[%c1_i32_7] : memref<2x!tpu.dma_semaphore, #tpu.memory_space<semaphore_mem>> -> memref<1x!tpu.dma_semaphore, #tpu.memory_space<semaphore_mem>>
    %53 = tpu.memref_squeeze %52 : memref<1x!tpu.dma_semaphore, #tpu.memory_space<semaphore_mem>> -> memref<!tpu.dma_semaphore, #tpu.memory_space<semaphore_mem>>
    tpu.wait_dma2 semaphore(%53 : memref<!tpu.dma_semaphore, #tpu.memory_space<semaphore_mem>>) src(%arg4 : memref<192x128xbf16, #tpu.memory_space<any>>) dst(%arg7 : memref<192x128xbf16, #tpu.memory_space<vmem>>)
    %c0_8 = arith.constant 0 : index
    %c0_9 = arith.constant 0 : index
    %54 = vector.load %arg6[%c0_8, %c0_9] : memref<2304x64xbf16, #tpu.memory_space<vmem>>, vector<576x64xbf16>
    %c1 = arith.constant 1 : index
    %c0_10 = arith.constant 0 : index
    %55 = vector.load %arg2[%c1, %c0_10] : memref<8x256xf32, #tpu.memory_space<vmem>>, vector<1x64xf32>
    %cst_11 = arith.constant 0.000000e+00 : f32
    %56 = vector.broadcast %cst_11 : f32 to vector<8x64xf32>
    %cst_12 = arith.constant 0.000000e+00 : f32
    %57 = vector.broadcast %cst_12 : f32 to vector<2x384xf32>
    %58 = tpu.concatenate %56, %49, %56 in 1 : vector<8x64xf32>, vector<8x256xf32>, vector<8x64xf32> -> vector<8x384xf32>
    %59 = vector.extract_strided_slice %58 {offsets = [0, 0], sizes = [6, 384], strides = [1, 1]} : vector<8x384xf32> to vector<6x384xf32>
    %60 = tpu.concatenate %57, %59 in 0 : vector<2x384xf32>, vector<6x384xf32> -> vector<8x384xf32>
    %61 = vector.extract_strided_slice %58 {offsets = [2, 0], sizes = [6, 384], strides = [1, 1]} : vector<8x384xf32> to vector<6x384xf32>
    %62 = tpu.concatenate %61, %57 in 0 : vector<6x384xf32>, vector<2x384xf32> -> vector<8x384xf32>
    %63 = vector.extract_strided_slice %60 {offsets = [0, 0], sizes = [8, 192], strides = [1, 1]} : vector<8x384xf32> to vector<8x192xf32>
    %64 = vector.extract_strided_slice %58 {offsets = [0, 0], sizes = [8, 192], strides = [1, 1]} : vector<8x384xf32> to vector<8x192xf32>
    %65 = vector.extract_strided_slice %62 {offsets = [0, 0], sizes = [8, 192], strides = [1, 1]} : vector<8x384xf32> to vector<8x192xf32>
    %66 = tpu.concatenate %63, %64, %65 in 1 : vector<8x192xf32>, vector<8x192xf32>, vector<8x192xf32> -> vector<8x576xf32>
    %67 = vector.extract_strided_slice %60 {offsets = [0, 64], sizes = [8, 192], strides = [1, 1]} : vector<8x384xf32> to vector<8x192xf32>
    %68 = vector.extract_strided_slice %58 {offsets = [0, 64], sizes = [8, 192], strides = [1, 1]} : vector<8x384xf32> to vector<8x192xf32>
    %69 = vector.extract_strided_slice %62 {offsets = [0, 64], sizes = [8, 192], strides = [1, 1]} : vector<8x384xf32> to vector<8x192xf32>
    %70 = tpu.concatenate %67, %68, %69 in 1 : vector<8x192xf32>, vector<8x192xf32>, vector<8x192xf32> -> vector<8x576xf32>
    %71 = vector.extract_strided_slice %60 {offsets = [0, 128], sizes = [8, 192], strides = [1, 1]} : vector<8x384xf32> to vector<8x192xf32>
    %72 = vector.extract_strided_slice %58 {offsets = [0, 128], sizes = [8, 192], strides = [1, 1]} : vector<8x384xf32> to vector<8x192xf32>
    %73 = vector.extract_strided_slice %62 {offsets = [0, 128], sizes = [8, 192], strides = [1, 1]} : vector<8x384xf32> to vector<8x192xf32>
    %74 = tpu.concatenate %71, %72, %73 in 1 : vector<8x192xf32>, vector<8x192xf32>, vector<8x192xf32> -> vector<8x576xf32>
    %75 = vector.extract_strided_slice %60 {offsets = [0, 192], sizes = [8, 192], strides = [1, 1]} : vector<8x384xf32> to vector<8x192xf32>
    %76 = vector.extract_strided_slice %58 {offsets = [0, 192], sizes = [8, 192], strides = [1, 1]} : vector<8x384xf32> to vector<8x192xf32>
    %77 = vector.extract_strided_slice %62 {offsets = [0, 192], sizes = [8, 192], strides = [1, 1]} : vector<8x384xf32> to vector<8x192xf32>
    %78 = tpu.concatenate %75, %76, %77 in 1 : vector<8x192xf32>, vector<8x192xf32>, vector<8x192xf32> -> vector<8x576xf32>
    %79 = tpu.concatenate %66, %70, %74, %78 in 0 : vector<8x576xf32>, vector<8x576xf32>, vector<8x576xf32>, vector<8x576xf32> -> vector<32x576xf32>
    %80 = arith.truncf %79 : vector<32x576xf32> to vector<32x576xbf16>
    %cst_13 = arith.constant dense<0.000000e+00> : vector<32x64xf32>
    %81 = tpu.matmul %80, %54, %cst_13 {dimension_numbers = #tpu.dot_dimension_numbers<[1], [0], [0], [1], [0, 0, 1, 1], [], []>} : vector<32x576xbf16>, vector<576x64xbf16>, vector<32x64xf32> -> vector<32x64xf32>
    %82 = vector.broadcast %55 : vector<1x64xf32> to vector<32x64xf32>
    %83 = arith.addf %81, %82 : vector<32x64xf32>
    %84 = vector.extract_strided_slice %83 {offsets = [0, 0], sizes = [8, 64], strides = [1, 1]} : vector<32x64xf32> to vector<8x64xf32>
    %85 = vector.extract_strided_slice %83 {offsets = [8, 0], sizes = [8, 64], strides = [1, 1]} : vector<32x64xf32> to vector<8x64xf32>
    %86 = vector.extract_strided_slice %83 {offsets = [16, 0], sizes = [8, 64], strides = [1, 1]} : vector<32x64xf32> to vector<8x64xf32>
    %87 = vector.extract_strided_slice %83 {offsets = [24, 0], sizes = [8, 64], strides = [1, 1]} : vector<32x64xf32> to vector<8x64xf32>
    %88 = tpu.concatenate %84, %85, %86, %87 in 1 : vector<8x64xf32>, vector<8x64xf32>, vector<8x64xf32>, vector<8x64xf32> -> vector<8x256xf32>
    %cst_14 = arith.constant 0.000000e+00 : f32
    %89 = vector.broadcast %cst_14 : f32 to vector<8x256xf32>
    %90 = arith.maximumf %88, %89 : vector<8x256xf32>
    %c576 = arith.constant 576 : index
    %c0_15 = arith.constant 0 : index
    %91 = vector.load %arg6[%c576, %c0_15] : memref<2304x64xbf16, #tpu.memory_space<vmem>>, vector<576x64xbf16>
    %c2 = arith.constant 2 : index
    %c0_16 = arith.constant 0 : index
    %92 = vector.load %arg2[%c2, %c0_16] : memref<8x256xf32, #tpu.memory_space<vmem>>, vector<1x64xf32>
    %cst_17 = arith.constant 0.000000e+00 : f32
    %93 = vector.broadcast %cst_17 : f32 to vector<8x64xf32>
    %cst_18 = arith.constant 0.000000e+00 : f32
    %94 = vector.broadcast %cst_18 : f32 to vector<2x384xf32>
    %95 = tpu.concatenate %93, %90, %93 in 1 : vector<8x64xf32>, vector<8x256xf32>, vector<8x64xf32> -> vector<8x384xf32>
    %96 = vector.extract_strided_slice %95 {offsets = [0, 0], sizes = [6, 384], strides = [1, 1]} : vector<8x384xf32> to vector<6x384xf32>
    %97 = tpu.concatenate %94, %96 in 0 : vector<2x384xf32>, vector<6x384xf32> -> vector<8x384xf32>
    %98 = vector.extract_strided_slice %95 {offsets = [2, 0], sizes = [6, 384], strides = [1, 1]} : vector<8x384xf32> to vector<6x384xf32>
    %99 = tpu.concatenate %98, %94 in 0 : vector<6x384xf32>, vector<2x384xf32> -> vector<8x384xf32>
    %100 = vector.extract_strided_slice %97 {offsets = [0, 0], sizes = [8, 192], strides = [1, 1]} : vector<8x384xf32> to vector<8x192xf32>
    %101 = vector.extract_strided_slice %95 {offsets = [0, 0], sizes = [8, 192], strides = [1, 1]} : vector<8x384xf32> to vector<8x192xf32>
    %102 = vector.extract_strided_slice %99 {offsets = [0, 0], sizes = [8, 192], strides = [1, 1]} : vector<8x384xf32> to vector<8x192xf32>
    %103 = tpu.concatenate %100, %101, %102 in 1 : vector<8x192xf32>, vector<8x192xf32>, vector<8x192xf32> -> vector<8x576xf32>
    %104 = vector.extract_strided_slice %97 {offsets = [0, 64], sizes = [8, 192], strides = [1, 1]} : vector<8x384xf32> to vector<8x192xf32>
    %105 = vector.extract_strided_slice %95 {offsets = [0, 64], sizes = [8, 192], strides = [1, 1]} : vector<8x384xf32> to vector<8x192xf32>
    %106 = vector.extract_strided_slice %99 {offsets = [0, 64], sizes = [8, 192], strides = [1, 1]} : vector<8x384xf32> to vector<8x192xf32>
    %107 = tpu.concatenate %104, %105, %106 in 1 : vector<8x192xf32>, vector<8x192xf32>, vector<8x192xf32> -> vector<8x576xf32>
    %108 = vector.extract_strided_slice %97 {offsets = [0, 128], sizes = [8, 192], strides = [1, 1]} : vector<8x384xf32> to vector<8x192xf32>
    %109 = vector.extract_strided_slice %95 {offsets = [0, 128], sizes = [8, 192], strides = [1, 1]} : vector<8x384xf32> to vector<8x192xf32>
    %110 = vector.extract_strided_slice %99 {offsets = [0, 128], sizes = [8, 192], strides = [1, 1]} : vector<8x384xf32> to vector<8x192xf32>
    %111 = tpu.concatenate %108, %109, %110 in 1 : vector<8x192xf32>, vector<8x192xf32>, vector<8x192xf32> -> vector<8x576xf32>
    %112 = vector.extract_strided_slice %97 {offsets = [0, 192], sizes = [8, 192], strides = [1, 1]} : vector<8x384xf32> to vector<8x192xf32>
    %113 = vector.extract_strided_slice %95 {offsets = [0, 192], sizes = [8, 192], strides = [1, 1]} : vector<8x384xf32> to vector<8x192xf32>
    %114 = vector.extract_strided_slice %99 {offsets = [0, 192], sizes = [8, 192], strides = [1, 1]} : vector<8x384xf32> to vector<8x192xf32>
    %115 = tpu.concatenate %112, %113, %114 in 1 : vector<8x192xf32>, vector<8x192xf32>, vector<8x192xf32> -> vector<8x576xf32>
    %116 = tpu.concatenate %103, %107, %111, %115 in 0 : vector<8x576xf32>, vector<8x576xf32>, vector<8x576xf32>, vector<8x576xf32> -> vector<32x576xf32>
    %117 = arith.truncf %116 : vector<32x576xf32> to vector<32x576xbf16>
    %cst_19 = arith.constant dense<0.000000e+00> : vector<32x64xf32>
    %118 = tpu.matmul %117, %91, %cst_19 {dimension_numbers = #tpu.dot_dimension_numbers<[1], [0], [0], [1], [0, 0, 1, 1], [], []>} : vector<32x576xbf16>, vector<576x64xbf16>, vector<32x64xf32> -> vector<32x64xf32>
    %119 = vector.broadcast %92 : vector<1x64xf32> to vector<32x64xf32>
    %120 = arith.addf %118, %119 : vector<32x64xf32>
    %121 = vector.extract_strided_slice %120 {offsets = [0, 0], sizes = [8, 64], strides = [1, 1]} : vector<32x64xf32> to vector<8x64xf32>
    %122 = vector.extract_strided_slice %120 {offsets = [8, 0], sizes = [8, 64], strides = [1, 1]} : vector<32x64xf32> to vector<8x64xf32>
    %123 = vector.extract_strided_slice %120 {offsets = [16, 0], sizes = [8, 64], strides = [1, 1]} : vector<32x64xf32> to vector<8x64xf32>
    %124 = vector.extract_strided_slice %120 {offsets = [24, 0], sizes = [8, 64], strides = [1, 1]} : vector<32x64xf32> to vector<8x64xf32>
    %125 = tpu.concatenate %121, %122, %123, %124 in 1 : vector<8x64xf32>, vector<8x64xf32>, vector<8x64xf32>, vector<8x64xf32> -> vector<8x256xf32>
    %126 = arith.addf %125, %49 : vector<8x256xf32>
    %cst_20 = arith.constant 0.000000e+00 : f32
    %127 = vector.broadcast %cst_20 : f32 to vector<8x256xf32>
    %128 = arith.maximumf %126, %127 : vector<8x256xf32>
    %c1152 = arith.constant 1152 : index
    %c0_21 = arith.constant 0 : index
    %129 = vector.load %arg6[%c1152, %c0_21] : memref<2304x64xbf16, #tpu.memory_space<vmem>>, vector<576x64xbf16>
    %c3 = arith.constant 3 : index
    %c0_22 = arith.constant 0 : index
    %130 = vector.load %arg2[%c3, %c0_22] : memref<8x256xf32, #tpu.memory_space<vmem>>, vector<1x64xf32>
    %cst_23 = arith.constant 0.000000e+00 : f32
    %131 = vector.broadcast %cst_23 : f32 to vector<8x64xf32>
    %cst_24 = arith.constant 0.000000e+00 : f32
    %132 = vector.broadcast %cst_24 : f32 to vector<2x384xf32>
    %133 = tpu.concatenate %131, %128, %131 in 1 : vector<8x64xf32>, vector<8x256xf32>, vector<8x64xf32> -> vector<8x384xf32>
    %134 = vector.extract_strided_slice %133 {offsets = [0, 0], sizes = [6, 384], strides = [1, 1]} : vector<8x384xf32> to vector<6x384xf32>
    %135 = tpu.concatenate %132, %134 in 0 : vector<2x384xf32>, vector<6x384xf32> -> vector<8x384xf32>
    %136 = vector.extract_strided_slice %133 {offsets = [2, 0], sizes = [6, 384], strides = [1, 1]} : vector<8x384xf32> to vector<6x384xf32>
    %137 = tpu.concatenate %136, %132 in 0 : vector<6x384xf32>, vector<2x384xf32> -> vector<8x384xf32>
    %138 = vector.extract_strided_slice %135 {offsets = [0, 0], sizes = [8, 192], strides = [1, 1]} : vector<8x384xf32> to vector<8x192xf32>
    %139 = vector.extract_strided_slice %133 {offsets = [0, 0], sizes = [8, 192], strides = [1, 1]} : vector<8x384xf32> to vector<8x192xf32>
    %140 = vector.extract_strided_slice %137 {offsets = [0, 0], sizes = [8, 192], strides = [1, 1]} : vector<8x384xf32> to vector<8x192xf32>
    %141 = tpu.concatenate %138, %139, %140 in 1 : vector<8x192xf32>, vector<8x192xf32>, vector<8x192xf32> -> vector<8x576xf32>
    %142 = vector.extract_strided_slice %135 {offsets = [0, 64], sizes = [8, 192], strides = [1, 1]} : vector<8x384xf32> to vector<8x192xf32>
    %143 = vector.extract_strided_slice %133 {offsets = [0, 64], sizes = [8, 192], strides = [1, 1]} : vector<8x384xf32> to vector<8x192xf32>
    %144 = vector.extract_strided_slice %137 {offsets = [0, 64], sizes = [8, 192], strides = [1, 1]} : vector<8x384xf32> to vector<8x192xf32>
    %145 = tpu.concatenate %142, %143, %144 in 1 : vector<8x192xf32>, vector<8x192xf32>, vector<8x192xf32> -> vector<8x576xf32>
    %146 = vector.extract_strided_slice %135 {offsets = [0, 128], sizes = [8, 192], strides = [1, 1]} : vector<8x384xf32> to vector<8x192xf32>
    %147 = vector.extract_strided_slice %133 {offsets = [0, 128], sizes = [8, 192], strides = [1, 1]} : vector<8x384xf32> to vector<8x192xf32>
    %148 = vector.extract_strided_slice %137 {offsets = [0, 128], sizes = [8, 192], strides = [1, 1]} : vector<8x384xf32> to vector<8x192xf32>
    %149 = tpu.concatenate %146, %147, %148 in 1 : vector<8x192xf32>, vector<8x192xf32>, vector<8x192xf32> -> vector<8x576xf32>
    %150 = vector.extract_strided_slice %135 {offsets = [0, 192], sizes = [8, 192], strides = [1, 1]} : vector<8x384xf32> to vector<8x192xf32>
    %151 = vector.extract_strided_slice %133 {offsets = [0, 192], sizes = [8, 192], strides = [1, 1]} : vector<8x384xf32> to vector<8x192xf32>
    %152 = vector.extract_strided_slice %137 {offsets = [0, 192], sizes = [8, 192], strides = [1, 1]} : vector<8x384xf32> to vector<8x192xf32>
    %153 = tpu.concatenate %150, %151, %152 in 1 : vector<8x192xf32>, vector<8x192xf32>, vector<8x192xf32> -> vector<8x576xf32>
    %154 = tpu.concatenate %141, %145, %149, %153 in 0 : vector<8x576xf32>, vector<8x576xf32>, vector<8x576xf32>, vector<8x576xf32> -> vector<32x576xf32>
    %155 = arith.truncf %154 : vector<32x576xf32> to vector<32x576xbf16>
    %cst_25 = arith.constant dense<0.000000e+00> : vector<32x64xf32>
    %156 = tpu.matmul %155, %129, %cst_25 {dimension_numbers = #tpu.dot_dimension_numbers<[1], [0], [0], [1], [0, 0, 1, 1], [], []>} : vector<32x576xbf16>, vector<576x64xbf16>, vector<32x64xf32> -> vector<32x64xf32>
    %157 = vector.broadcast %130 : vector<1x64xf32> to vector<32x64xf32>
    %158 = arith.addf %156, %157 : vector<32x64xf32>
    %159 = vector.extract_strided_slice %158 {offsets = [0, 0], sizes = [8, 64], strides = [1, 1]} : vector<32x64xf32> to vector<8x64xf32>
    %160 = vector.extract_strided_slice %158 {offsets = [8, 0], sizes = [8, 64], strides = [1, 1]} : vector<32x64xf32> to vector<8x64xf32>
    %161 = vector.extract_strided_slice %158 {offsets = [16, 0], sizes = [8, 64], strides = [1, 1]} : vector<32x64xf32> to vector<8x64xf32>
    %162 = vector.extract_strided_slice %158 {offsets = [24, 0], sizes = [8, 64], strides = [1, 1]} : vector<32x64xf32> to vector<8x64xf32>
    %163 = tpu.concatenate %159, %160, %161, %162 in 1 : vector<8x64xf32>, vector<8x64xf32>, vector<8x64xf32>, vector<8x64xf32> -> vector<8x256xf32>
    %cst_26 = arith.constant 0.000000e+00 : f32
    %164 = vector.broadcast %cst_26 : f32 to vector<8x256xf32>
    %165 = arith.maximumf %163, %164 : vector<8x256xf32>
    %c1728 = arith.constant 1728 : index
    %c0_27 = arith.constant 0 : index
    %166 = vector.load %arg6[%c1728, %c0_27] : memref<2304x64xbf16, #tpu.memory_space<vmem>>, vector<576x64xbf16>
    %c4 = arith.constant 4 : index
    %c0_28 = arith.constant 0 : index
    %167 = vector.load %arg2[%c4, %c0_28] : memref<8x256xf32, #tpu.memory_space<vmem>>, vector<1x64xf32>
    %cst_29 = arith.constant 0.000000e+00 : f32
    %168 = vector.broadcast %cst_29 : f32 to vector<8x64xf32>
    %cst_30 = arith.constant 0.000000e+00 : f32
    %169 = vector.broadcast %cst_30 : f32 to vector<2x384xf32>
    %170 = tpu.concatenate %168, %165, %168 in 1 : vector<8x64xf32>, vector<8x256xf32>, vector<8x64xf32> -> vector<8x384xf32>
    %171 = vector.extract_strided_slice %170 {offsets = [0, 0], sizes = [6, 384], strides = [1, 1]} : vector<8x384xf32> to vector<6x384xf32>
    %172 = tpu.concatenate %169, %171 in 0 : vector<2x384xf32>, vector<6x384xf32> -> vector<8x384xf32>
    %173 = vector.extract_strided_slice %170 {offsets = [2, 0], sizes = [6, 384], strides = [1, 1]} : vector<8x384xf32> to vector<6x384xf32>
    %174 = tpu.concatenate %173, %169 in 0 : vector<6x384xf32>, vector<2x384xf32> -> vector<8x384xf32>
    %175 = vector.extract_strided_slice %172 {offsets = [0, 0], sizes = [8, 192], strides = [1, 1]} : vector<8x384xf32> to vector<8x192xf32>
    %176 = vector.extract_strided_slice %170 {offsets = [0, 0], sizes = [8, 192], strides = [1, 1]} : vector<8x384xf32> to vector<8x192xf32>
    %177 = vector.extract_strided_slice %174 {offsets = [0, 0], sizes = [8, 192], strides = [1, 1]} : vector<8x384xf32> to vector<8x192xf32>
    %178 = tpu.concatenate %175, %176, %177 in 1 : vector<8x192xf32>, vector<8x192xf32>, vector<8x192xf32> -> vector<8x576xf32>
    %179 = vector.extract_strided_slice %172 {offsets = [0, 64], sizes = [8, 192], strides = [1, 1]} : vector<8x384xf32> to vector<8x192xf32>
    %180 = vector.extract_strided_slice %170 {offsets = [0, 64], sizes = [8, 192], strides = [1, 1]} : vector<8x384xf32> to vector<8x192xf32>
    %181 = vector.extract_strided_slice %174 {offsets = [0, 64], sizes = [8, 192], strides = [1, 1]} : vector<8x384xf32> to vector<8x192xf32>
    %182 = tpu.concatenate %179, %180, %181 in 1 : vector<8x192xf32>, vector<8x192xf32>, vector<8x192xf32> -> vector<8x576xf32>
    %183 = vector.extract_strided_slice %172 {offsets = [0, 128], sizes = [8, 192], strides = [1, 1]} : vector<8x384xf32> to vector<8x192xf32>
    %184 = vector.extract_strided_slice %170 {offsets = [0, 128], sizes = [8, 192], strides = [1, 1]} : vector<8x384xf32> to vector<8x192xf32>
    %185 = vector.extract_strided_slice %174 {offsets = [0, 128], sizes = [8, 192], strides = [1, 1]} : vector<8x384xf32> to vector<8x192xf32>
    %186 = tpu.concatenate %183, %184, %185 in 1 : vector<8x192xf32>, vector<8x192xf32>, vector<8x192xf32> -> vector<8x576xf32>
    %187 = vector.extract_strided_slice %172 {offsets = [0, 192], sizes = [8, 192], strides = [1, 1]} : vector<8x384xf32> to vector<8x192xf32>
    %188 = vector.extract_strided_slice %170 {offsets = [0, 192], sizes = [8, 192], strides = [1, 1]} : vector<8x384xf32> to vector<8x192xf32>
    %189 = vector.extract_strided_slice %174 {offsets = [0, 192], sizes = [8, 192], strides = [1, 1]} : vector<8x384xf32> to vector<8x192xf32>
    %190 = tpu.concatenate %187, %188, %189 in 1 : vector<8x192xf32>, vector<8x192xf32>, vector<8x192xf32> -> vector<8x576xf32>
    %191 = tpu.concatenate %178, %182, %186, %190 in 0 : vector<8x576xf32>, vector<8x576xf32>, vector<8x576xf32>, vector<8x576xf32> -> vector<32x576xf32>
    %192 = arith.truncf %191 : vector<32x576xf32> to vector<32x576xbf16>
    %cst_31 = arith.constant dense<0.000000e+00> : vector<32x64xf32>
    %193 = tpu.matmul %192, %166, %cst_31 {dimension_numbers = #tpu.dot_dimension_numbers<[1], [0], [0], [1], [0, 0, 1, 1], [], []>} : vector<32x576xbf16>, vector<576x64xbf16>, vector<32x64xf32> -> vector<32x64xf32>
    %194 = vector.broadcast %167 : vector<1x64xf32> to vector<32x64xf32>
    %195 = arith.addf %193, %194 : vector<32x64xf32>
    %196 = vector.extract_strided_slice %195 {offsets = [0, 0], sizes = [8, 64], strides = [1, 1]} : vector<32x64xf32> to vector<8x64xf32>
    %197 = vector.extract_strided_slice %195 {offsets = [8, 0], sizes = [8, 64], strides = [1, 1]} : vector<32x64xf32> to vector<8x64xf32>
    %198 = vector.extract_strided_slice %195 {offsets = [16, 0], sizes = [8, 64], strides = [1, 1]} : vector<32x64xf32> to vector<8x64xf32>
    %199 = vector.extract_strided_slice %195 {offsets = [24, 0], sizes = [8, 64], strides = [1, 1]} : vector<32x64xf32> to vector<8x64xf32>
    %200 = tpu.concatenate %196, %197, %198, %199 in 1 : vector<8x64xf32>, vector<8x64xf32>, vector<8x64xf32>, vector<8x64xf32> -> vector<8x256xf32>
    %201 = arith.addf %200, %128 : vector<8x256xf32>
    %cst_32 = arith.constant 0.000000e+00 : f32
    %202 = vector.broadcast %cst_32 : f32 to vector<8x256xf32>
    %203 = arith.maximumf %201, %202 : vector<8x256xf32>
    %204 = vector.extract_strided_slice %203 {offsets = [0, 0], sizes = [8, 64], strides = [1, 1]} : vector<8x256xf32> to vector<8x64xf32>
    %205 = vector.extract_strided_slice %203 {offsets = [0, 64], sizes = [8, 64], strides = [1, 1]} : vector<8x256xf32> to vector<8x64xf32>
    %206 = arith.addf %204, %205 : vector<8x64xf32>
    %207 = vector.extract_strided_slice %203 {offsets = [0, 128], sizes = [8, 64], strides = [1, 1]} : vector<8x256xf32> to vector<8x64xf32>
    %208 = arith.addf %206, %207 : vector<8x64xf32>
    %209 = vector.extract_strided_slice %203 {offsets = [0, 192], sizes = [8, 64], strides = [1, 1]} : vector<8x256xf32> to vector<8x64xf32>
    %210 = arith.addf %208, %209 : vector<8x64xf32>
    %211 = vector.extract_strided_slice %210 {offsets = [0, 0], sizes = [2, 64], strides = [1, 1]} : vector<8x64xf32> to vector<2x64xf32>
    %212 = vector.extract_strided_slice %210 {offsets = [2, 0], sizes = [2, 64], strides = [1, 1]} : vector<8x64xf32> to vector<2x64xf32>
    %213 = arith.addf %211, %212 : vector<2x64xf32>
    %214 = vector.extract_strided_slice %210 {offsets = [4, 0], sizes = [2, 64], strides = [1, 1]} : vector<8x64xf32> to vector<2x64xf32>
    %215 = arith.addf %213, %214 : vector<2x64xf32>
    %216 = vector.extract_strided_slice %210 {offsets = [6, 0], sizes = [2, 64], strides = [1, 1]} : vector<8x64xf32> to vector<2x64xf32>
    %217 = arith.addf %215, %216 : vector<2x64xf32>
    %cst_33 = arith.constant 6.250000e-02 : f32
    %218 = vector.broadcast %cst_33 : f32 to vector<2x64xf32>
    %219 = arith.mulf %217, %218 : vector<2x64xf32>
    %220 = arith.truncf %219 : vector<2x64xf32> to vector<2x64xbf16>
    %c0_34 = arith.constant 0 : index
    %c0_35 = arith.constant 0 : index
    %221 = vector.load %arg7[%c0_34, %c0_35] : memref<192x128xbf16, #tpu.memory_space<vmem>>, vector<64x128xbf16>
    %cst_36 = arith.constant dense<0.000000e+00> : vector<2x128xf32>
    %222 = tpu.matmul %220, %221, %cst_36 {dimension_numbers = #tpu.dot_dimension_numbers<[1], [0], [0], [1], [0, 0, 1, 1], [], []>} : vector<2x64xbf16>, vector<64x128xbf16>, vector<2x128xf32> -> vector<2x128xf32>
    %c5 = arith.constant 5 : index
    %c0_37 = arith.constant 0 : index
    %223 = vector.load %arg2[%c5, %c0_37] : memref<8x256xf32, #tpu.memory_space<vmem>>, vector<1x128xf32>
    %224 = vector.broadcast %223 : vector<1x128xf32> to vector<2x128xf32>
    %225 = arith.addf %222, %224 : vector<2x128xf32>
    %cst_38 = arith.constant 0.000000e+00 : f32
    %226 = vector.broadcast %cst_38 : f32 to vector<2x128xf32>
    %227 = arith.maximumf %225, %226 : vector<2x128xf32>
    %228 = arith.truncf %227 : vector<2x128xf32> to vector<2x128xbf16>
    %c64 = arith.constant 64 : index
    %c0_39 = arith.constant 0 : index
    %229 = vector.load %arg7[%c64, %c0_39] : memref<192x128xbf16, #tpu.memory_space<vmem>>, vector<128x128xbf16>
    %cst_40 = arith.constant dense<0.000000e+00> : vector<2x128xf32>
    %230 = tpu.matmul %228, %229, %cst_40 {dimension_numbers = #tpu.dot_dimension_numbers<[1], [0], [0], [1], [0, 0, 1, 1], [], []>} : vector<2x128xbf16>, vector<128x128xbf16>, vector<2x128xf32> -> vector<2x128xf32>
    %c6 = arith.constant 6 : index
    %c0_41 = arith.constant 0 : index
    %231 = vector.load %arg2[%c6, %c0_41] : memref<8x256xf32, #tpu.memory_space<vmem>>, vector<1x128xf32>
    %232 = vector.broadcast %231 : vector<1x128xf32> to vector<2x128xf32>
    %233 = arith.addf %230, %232 : vector<2x128xf32>
    %234 = math.tanh %233 : vector<2x128xf32>
    %c0_42 = arith.constant 0 : index
    %c0_43 = arith.constant 0 : index
    %235 = vector.load %arg5[%c0_42, %c0_43] : memref<2x128xf32, #tpu.memory_space<vmem>>, vector<2x128xf32>
    tpu.vector_store %arg5[%c0_42, %c0_43], %234 {strides = array<i32>} : memref<2x128xf32, #tpu.memory_space<vmem>>, vector<2x128xf32>,
    return
  }
}

</mosaic_0001>

<bundles_post_ra>
// kernel: resnet_forward.1
= control target key start
LH: loop header
LB: loop body
LE: loop exit
PB: predicated region body
PF: predicated region fallthrough
CT: control target
= control target key end

     0   :  { %10 = vsyncpa [#allocation6], 0  ;;  %s5213_s0 = inlined_call_operand.vmem [shape: bf16[128,256], index: 0, kind: input, shape index: {}]   ;;  %s5214_s1 = inlined_call_operand.vmem [shape: bf16[256,64], index: 1, kind: input, shape index: {}]   ;;  %s5215_s2 = inlined_call_operand.vmem [shape: f32[8,256], index: 2, kind: input, shape index: {}]   ;;  %s5216_s3 = inlined_call_operand.vmem [shape: bf16[2304,64], index: 3, kind: input, shape index: {}]   ;;  %s5217_s4 = inlined_call_operand.vmem [shape: bf16[192,128], index: 4, kind: input, shape index: {}]   ;;  %s5218_s5 = inlined_call_operand.hbm [shape: f32[2,128], index: 5, kind: output, shape index: {}]  }
   0x1   :  { %v28_v0 = vld [vmem:[%s5216_s3] sm:$0xff]  ;;  %v30_v1 = vld [vmem:[%s5216_s3 + $0x8] sm:$0xff]  ;;  %v32_v2 = vld [vmem:[%s5216_s3 + $0x10] sm:$0xff] }
   0x2   :  { %29 = vst [vmem:[#allocation2 + $0x2b0] sm:$0xff] %v28_v0  ;;  %v34_v3 = vld [vmem:[%s5216_s3 + $0x18] sm:$0xff]  ;;  %v36_v4 = vld [vmem:[%s5216_s3 + $0x20] sm:$0xff]  ;;  %v38_v5 = vld [vmem:[%s5216_s3 + $0x28] sm:$0xff] }
   0x3   :  { %31 = vst [vmem:[#allocation2 + $0x3b0] sm:$0xff] %v30_v1  ;;  %v40_v6 = vld [vmem:[%s5216_s3 + $0x30] sm:$0xff]  ;;  %v42_v7 = vld [vmem:[%s5216_s3 + $0x38] sm:$0xff]  ;;  %v44_v8 = vld [vmem:[%s5216_s3 + $0x40] sm:$0xff] }
   0x4   :  { %33 = vst [vmem:[#allocation2 + $0x10] sm:$0xff] %v32_v2  ;;  %v46_v9 = vld [vmem:[%s5216_s3 + $0x48] sm:$0xff]  ;;  %v48_v10 = vld [vmem:[%s5216_s3 + $0x50] sm:$0xff]  ;;  %v50_v11 = vld [vmem:[%s5216_s3 + $0x58] sm:$0xff] }
   0x5   :  { %35 = vst [vmem:[#allocation2 + $0x448] sm:$0xff] %v34_v3  ;;  %v52_v12 = vld [vmem:[%s5216_s3 + $0x60] sm:$0xff]  ;;  %v54_v13 = vld [vmem:[%s5216_s3 + $0x68] sm:$0xff]  ;;  %v56_v14 = vld [vmem:[%s5216_s3 + $0x70] sm:$0xff] }
   0x6   :  { %37 = vst [vmem:[#allocation2 + $0x320] sm:$0xff] %v36_v4  ;;  %v58_v15 = vld [vmem:[%s5216_s3 + $0x78] sm:$0xff]  ;;  %v60_v16 = vld [vmem:[%s5216_s3 + $0x80] sm:$0xff]  ;;  %v62_v17 = vld [vmem:[%s5216_s3 + $0x88] sm:$0xff] }
   0x7   :  { %39 = vst [vmem:[#allocation2 + $0x438] sm:$0xff] %v38_v5  ;;  %v64_v18 = vld [vmem:[%s5216_s3 + $0x90] sm:$0xff]  ;;  %v66_v19 = vld [vmem:[%s5216_s3 + $0x98] sm:$0xff]  ;;  %v68_v20 = vld [vmem:[%s5216_s3 + $0xa0] sm:$0xff] }
   0x8   :  { %41 = vst [vmem:[#allocation2 + $0x370] sm:$0xff] %v40_v6  ;;  %v70_v21 = vld [vmem:[%s5216_s3 + $0xa8] sm:$0xff]  ;;  %v72_v22 = vld [vmem:[%s5216_s3 + $0xb0] sm:$0xff]  ;;  %v74_v23 = vld [vmem:[%s5216_s3 + $0xb8] sm:$0xff] }
   0x9   :  { %43 = vst [vmem:[#allocation2 + $0x100] sm:$0xff] %v42_v7  ;;  %v76_v24 = vld [vmem:[%s5216_s3 + $0xc0] sm:$0xff]  ;;  %v78_v25 = vld [vmem:[%s5216_s3 + $0xc8] sm:$0xff]  ;;  %v80_v26 = vld [vmem:[%s5216_s3 + $0xd0] sm:$0xff] }
   0xa   :  { %45 = vst [vmem:[#allocation2 + $0x300] sm:$0xff] %v44_v8  ;;  %v82_v27 = vld [vmem:[%s5216_s3 + $0xd8] sm:$0xff]  ;;  %v84_v28 = vld [vmem:[%s5216_s3 + $0xe0] sm:$0xff]  ;;  %v86_v29 = vld [vmem:[%s5216_s3 + $0xe8] sm:$0xff] }
   0xb   :  { %47 = vst [vmem:[#allocation2 + $0x2f0] sm:$0xff] %v46_v9  ;;  %v88_v30 = vld [vmem:[%s5216_s3 + $0xf0] sm:$0xff]  ;;  %v90_v31 = vld [vmem:[%s5216_s3 + $0xf8] sm:$0xff]  ;;  %v92_v32 = vld [vmem:[%s5216_s3 + $0x100] sm:$0xff] }
   0xc   :  { %49 = vst [vmem:[#allocation2 + $0x290] sm:$0xff] %v48_v10  ;;  %v94_v33 = vld [vmem:[%s5216_s3 + $0x108] sm:$0xff]  ;;  %v96_v34 = vld [vmem:[%s5216_s3 + $0x110] sm:$0xff]  ;;  %v98_v35 = vld [vmem:[%s5216_s3 + $0x118] sm:$0xff] }
   0xd   :  { %51 = vst [vmem:[#allocation2 + $0x380] sm:$0xff] %v50_v11  ;;  %v100_v36 = vld [vmem:[%s5216_s3 + $0x120] sm:$0xff]  ;;  %v102_v37 = vld [vmem:[%s5216_s3 + $0x128] sm:$0xff]  ;;  %v104_v38 = vld [vmem:[%s5216_s3 + $0x130] sm:$0xff] }
   0xe   :  { %53 = vst [vmem:[#allocation2 + $0x48] sm:$0xff] %v52_v12  ;;  %v106_v39 = vld [vmem:[%s5216_s3 + $0x138] sm:$0xff]  ;;  %v108_v40 = vld [vmem:[%s5216_s3 + $0x140] sm:$0xff]  ;;  %v110_v41 = vld [vmem:[%s5216_s3 + $0x148] sm:$0xff] }
   0xf   :  { %55 = vst [vmem:[#allocation2 + $0xc0] sm:$0xff] %v54_v13  ;;  %v112_v42 = vld [vmem:[%s5216_s3 + $0x150] sm:$0xff]  ;;  %v114_v43 = vld [vmem:[%s5216_s3 + $0x158] sm:$0xff]  ;;  %v116_v44 = vld [vmem:[%s5216_s3 + $0x160] sm:$0xff] }
  0x10   :  { %57 = vst [vmem:[#allocation2 + $0x30] sm:$0xff] %v56_v14  ;;  %v118_v45 = vld [vmem:[%s5216_s3 + $0x168] sm:$0xff]  ;;  %v120_v46 = vld [vmem:[%s5216_s3 + $0x170] sm:$0xff]  ;;  %v122_v47 = vld [vmem:[%s5216_s3 + $0x178] sm:$0xff] }
  0x11   :  { %59 = vst [vmem:[#allocation2 + $0x148] sm:$0xff] %v58_v15  ;;  %v124_v48 = vld [vmem:[%s5216_s3 + $0x180] sm:$0xff]  ;;  %v126_v49 = vld [vmem:[%s5216_s3 + $0x188] sm:$0xff]  ;;  %v128_v50 = vld [vmem:[%s5216_s3 + $0x190] sm:$0xff] }
  0x12   :  { %61 = vst [vmem:[#allocation2 + $0x208] sm:$0xff] %v60_v16  ;;  %v130_v51 = vld [vmem:[%s5216_s3 + $0x198] sm:$0xff]  ;;  %v132_v52 = vld [vmem:[%s5216_s3 + $0x1a0] sm:$0xff]  ;;  %v134_v53 = vld [vmem:[%s5216_s3 + $0x1a8] sm:$0xff] }
  0x13   :  { %63 = vst [vmem:[#allocation2 + $0x88] sm:$0xff] %v62_v17  ;;  %v136_v54 = vld [vmem:[%s5216_s3 + $0x1b0] sm:$0xff]  ;;  %v138_v55 = vld [vmem:[%s5216_s3 + $0x1b8] sm:$0xff]  ;;  %v140_v56 = vld [vmem:[%s5216_s3 + $0x1c0] sm:$0xff] }
  0x14   :  { %65 = vst [vmem:[#allocation2 + $0x348] sm:$0xff] %v64_v18  ;;  %v142_v57 = vld [vmem:[%s5216_s3 + $0x1c8] sm:$0xff]  ;;  %v144_v58 = vld [vmem:[%s5216_s3 + $0x1d0] sm:$0xff]  ;;  %v146_v59 = vld [vmem:[%s5216_s3 + $0x1d8] sm:$0xff] }
  0x15   :  { %67 = vst [vmem:[#allocation2 + $0xe0] sm:$0xff] %v66_v19  ;;  %v148_v60 = vld [vmem:[%s5216_s3 + $0x1e0] sm:$0xff]  ;;  %v150_v61 = vld [vmem:[%s5216_s3 + $0x1e8] sm:$0xff]  ;;  %v152_v62 = vld [vmem:[%s5216_s3 + $0x1f0] sm:$0xff] }
  0x16   :  { %69 = vst [vmem:[#allocation2 + $0x368] sm:$0xff] %v68_v20  ;;  %v154_v63 = vld [vmem:[%s5216_s3 + $0x1f8] sm:$0xff]  ;;  %v156_v0 = vld [vmem:[%s5216_s3 + $0x200] sm:$0xff]  ;;  %v158_v1 = vld [vmem:[%s5216_s3 + $0x208] sm:$0xff] }
  0x17   :  { %71 = vst [vmem:[#allocation2 + $0x3e0] sm:$0xff] %v70_v21  ;;  %v160_v2 = vld [vmem:[%s5216_s3 + $0x210] sm:$0xff]  ;;  %v162_v3 = vld [vmem:[%s5216_s3 + $0x218] sm:$0xff]  ;;  %v164_v4 = vld [vmem:[%s5216_s3 + $0x220] sm:$0xff] }
  0x18   :  { %73 = vst [vmem:[#allocation2 + $0x1a8] sm:$0xff] %v72_v22  ;;  %v166_v5 = vld [vmem:[%s5216_s3 + $0x228] sm:$0xff]  ;;  %v168_v6 = vld [vmem:[%s5216_s3 + $0x230] sm:$0xff]  ;;  %v170_v7 = vld [vmem:[%s5216_s3 + $0x238] sm:$0xff] }
  0x19   :  { %75 = vst [vmem:[#allocation2 + $0x450] sm:$0xff] %v74_v23  ;;  %v172_v8 = vld [vmem:[%s5216_s3 + $0x240] sm:$0xff]  ;;  %v174_v9 = vld [vmem:[%s5216_s3 + $0x248] sm:$0xff]  ;;  %v176_v10 = vld [vmem:[%s5216_s3 + $0x250] sm:$0xff] }
  0x1a   :  { %77 = vst [vmem:[#allocation2 + $0x420] sm:$0xff] %v76_v24  ;;  %v178_v11 = vld [vmem:[%s5216_s3 + $0x258] sm:$0xff]  ;;  %v180_v12 = vld [vmem:[%s5216_s3 + $0x260] sm:$0xff]  ;;  %v182_v13 = vld [vmem:[%s5216_s3 + $0x268] sm:$0xff] }
  0x1b   :  { %79 = vst [vmem:[#allocation2 + $0x398] sm:$0xff] %v78_v25  ;;  %v184_v14 = vld [vmem:[%s5216_s3 + $0x270] sm:$0xff]  ;;  %v186_v15 = vld [vmem:[%s5216_s3 + $0x278] sm:$0xff]  ;;  %v188_v16 = vld [vmem:[%s5216_s3 + $0x280] sm:$0xff] }
  0x1c   :  { %81 = vst [vmem:[#allocation2 + $0x350] sm:$0xff] %v80_v26  ;;  %v190_v17 = vld [vmem:[%s5216_s3 + $0x288] sm:$0xff]  ;;  %v192_v18 = vld [vmem:[%s5216_s3 + $0x290] sm:$0xff]  ;;  %v194_v19 = vld [vmem:[%s5216_s3 + $0x298] sm:$0xff] }
  0x1d   :  { %83 = vst [vmem:[#allocation2 + $0xc8] sm:$0xff] %v82_v27  ;;  %v196_v20 = vld [vmem:[%s5216_s3 + $0x2a0] sm:$0xff]  ;;  %v198_v21 = vld [vmem:[%s5216_s3 + $0x2a8] sm:$0xff]  ;;  %v200_v22 = vld [vmem:[%s5216_s3 + $0x2b0] sm:$0xff] }
  0x1e   :  { %85 = vst [vmem:[#allocation2 + $0x240] sm:$0xff] %v84_v28  ;;  %v202_v23 = vld [vmem:[%s5216_s3 + $0x2b8] sm:$0xff]  ;;  %v204_v24 = vld [vmem:[%s5216_s3 + $0x2c0] sm:$0xff]  ;;  %v206_v25 = vld [vmem:[%s5216_s3 + $0x2c8] sm:$0xff] }
  0x1f   :  { %87 = vst [vmem:[#allocation2 + $0x390] sm:$0xff] %v86_v29  ;;  %v208_v26 = vld [vmem:[%s5216_s3 + $0x2d0] sm:$0xff]  ;;  %v210_v27 = vld [vmem:[%s5216_s3 + $0x2d8] sm:$0xff]  ;;  %v212_v28 = vld [vmem:[%s5216_s3 + $0x2e0] sm:$0xff] }
  0x20   :  { %89 = vst [vmem:[#allocation2 + $0x458] sm:$0xff] %v88_v30  ;;  %v214_v29 = vld [vmem:[%s5216_s3 + $0x2e8] sm:$0xff]  ;;  %v216_v30 = vld [vmem:[%s5216_s3 + $0x2f0] sm:$0xff] }
  0x21   :  { %91 = vst [vmem:[#allocation2 + $0x68] sm:$0xff] %v90_v31  ;;  %v218_v31 = vld [vmem:[%s5216_s3 + $0x2f8] sm:$0xff] }
  0x22   :  { %93 = vst [vmem:[#allocation2 + $0x470] sm:$0xff] %v92_v32  ;;  %v220_v32 = vld [vmem:[%s5216_s3 + $0x300] sm:$0xff] }
  0x23   :  { %95 = vst [vmem:[#allocation2 + $0x298] sm:$0xff] %v94_v33  ;;  %v222_v33 = vld [vmem:[%s5216_s3 + $0x308] sm:$0xff] }
  0x24   :  { %97 = vst [vmem:[#allocation2 + $0x278] sm:$0xff] %v96_v34  ;;  %v224_v34 = vld [vmem:[%s5216_s3 + $0x310] sm:$0xff] }
  0x25   :  { %99 = vst [vmem:[#allocation2 + $0x170] sm:$0xff] %v98_v35  ;;  %v226_v35 = vld [vmem:[%s5216_s3 + $0x318] sm:$0xff] }
  0x26   :  { %101 = vst [vmem:[#allocation2 + $0x198] sm:$0xff] %v100_v36  ;;  %v228_v36 = vld [vmem:[%s5216_s3 + $0x320] sm:$0xff] }
  0x27   :  { %103 = vst [vmem:[#allocation2 + $0xb0] sm:$0xff] %v102_v37  ;;  %v230_v37 = vld [vmem:[%s5216_s3 + $0x328] sm:$0xff] }
  0x28   :  { %105 = vst [vmem:[#allocation2 + $0x20] sm:$0xff] %v104_v38  ;;  %v232_v38 = vld [vmem:[%s5216_s3 + $0x330] sm:$0xff] }
  0x29   :  { %107 = vst [vmem:[#allocation2 + $0x1e8] sm:$0xff] %v106_v39  ;;  %v234_v39 = vld [vmem:[%s5216_s3 + $0x338] sm:$0xff] }
  0x2a   :  { %109 = vst [vmem:[#allocation2 + $0x1f8] sm:$0xff] %v108_v40  ;;  %v236_v40 = vld [vmem:[%s5216_s3 + $0x340] sm:$0xff] }
  0x2b   :  { %111 = vst [vmem:[#allocation2 + $0x60] sm:$0xff] %v110_v41  ;;  %v238_v41 = vld [vmem:[%s5216_s3 + $0x348] sm:$0xff] }
  0x2c   :  { %113 = vst [vmem:[#allocation2 + $0x3c8] sm:$0xff] %v112_v42  ;;  %v240_v42 = vld [vmem:[%s5216_s3 + $0x350] sm:$0xff] }
  0x2d   :  { %115 = vst [vmem:[#allocation2 + $0x18] sm:$0xff] %v114_v43  ;;  %v242_v43 = vld [vmem:[%s5216_s3 + $0x358] sm:$0xff] }
  0x2e   :  { %117 = vst [vmem:[#allocation2 + $0xa0] sm:$0xff] %v116_v44  ;;  %v244_v44 = vld [vmem:[%s5216_s3 + $0x360] sm:$0xff] }
  0x2f   :  { %119 = vst [vmem:[#allocation2 + $0x1d0] sm:$0xff] %v118_v45  ;;  %v246_v45 = vld [vmem:[%s5216_s3 + $0x368] sm:$0xff] }
  0x30   :  { %121 = vst [vmem:[#allocation2 + $0x258] sm:$0xff] %v120_v46  ;;  %v248_v46 = vld [vmem:[%s5216_s3 + $0x370] sm:$0xff] }
  0x31   :  { %123 = vst [vmem:[#allocation2 + $0xd0] sm:$0xff] %v122_v47  ;;  %v250_v47 = vld [vmem:[%s5216_s3 + $0x378] sm:$0xff] }
  0x32   :  { %125 = vst [vmem:[#allocation2 + $0x408] sm:$0xff] %v124_v48  ;;  %v252_v48 = vld [vmem:[%s5216_s3 + $0x380] sm:$0xff] }
  0x33   :  { %127 = vst [vmem:[#allocation2 + $0x2c0] sm:$0xff] %v126_v49  ;;  %v254_v49 = vld [vmem:[%s5216_s3 + $0x388] sm:$0xff] }
  0x34   :  { %129 = vst [vmem:[#allocation2 + $0x3f8] sm:$0xff] %v128_v50  ;;  %v256_v50 = vld [vmem:[%s5216_s3 + $0x390] sm:$0xff] }
  0x35   :  { %131 = vst [vmem:[#allocation2 + $0x3f0] sm:$0xff] %v130_v51  ;;  %v258_v51 = vld [vmem:[%s5216_s3 + $0x398] sm:$0xff] }
  0x36   :  { %133 = vst [vmem:[#allocation2 + $0x338] sm:$0xff] %v132_v52  ;;  %v260_v52 = vld [vmem:[%s5216_s3 + $0x3a0] sm:$0xff] }
  0x37   :  { %135 = vst [vmem:[#allocation2 + $0x248] sm:$0xff] %v134_v53  ;;  %v262_v53 = vld [vmem:[%s5216_s3 + $0x3a8] sm:$0xff] }
  0x38   :  { %137 = vst [vmem:[#allocation2 + $0x330] sm:$0xff] %v136_v54  ;;  %v264_v54 = vld [vmem:[%s5216_s3 + $0x3b0] sm:$0xff] }
  0x39   :  { %139 = vst [vmem:[#allocation2 + $0x220] sm:$0xff] %v138_v55  ;;  %v266_v55 = vld [vmem:[%s5216_s3 + $0x3b8] sm:$0xff] }
  0x3a   :  { %141 = vst [vmem:[#allocation2 + $0x1b8] sm:$0xff] %v140_v56  ;;  %v268_v56 = vld [vmem:[%s5216_s3 + $0x3c0] sm:$0xff] }
  0x3b   :  { %143 = vst [vmem:[#allocation2 + $0x310] sm:$0xff] %v142_v57  ;;  %v270_v57 = vld [vmem:[%s5216_s3 + $0x3c8] sm:$0xff] }
  0x3c   :  { %145 = vst [vmem:[#allocation2 + $0x280] sm:$0xff] %v144_v58  ;;  %v272_v58 = vld [vmem:[%s5216_s3 + $0x3d0] sm:$0xff] }
  0x3d   :  { %147 = vst [vmem:[#allocation2 + $0x288] sm:$0xff] %v146_v59  ;;  %v274_v59 = vld [vmem:[%s5216_s3 + $0x3d8] sm:$0xff] }
  0x3e   :  { %149 = vst [vmem:[#allocation2 + $0x2e8] sm:$0xff] %v148_v60  ;;  %v276_v60 = vld [vmem:[%s5216_s3 + $0x3e0] sm:$0xff] }
  0x3f   :  { %151 = vst [vmem:[#allocation2 + $0x120] sm:$0xff] %v150_v61  ;;  %v278_v61 = vld [vmem:[%s5216_s3 + $0x3e8] sm:$0xff] }
  0x40   :  { %153 = vst [vmem:[#allocation2 + $0x2c8] sm:$0xff] %v152_v62  ;;  %v280_v62 = vld [vmem:[%s5216_s3 + $0x3f0] sm:$0xff] }
  0x41   :  { %155 = vst [vmem:[#allocation2 + $0x3c0] sm:$0xff] %v154_v63  ;;  %v282_v63 = vld [vmem:[%s5216_s3 + $0x3f8] sm:$0xff] }
  0x42   :  { %157 = vst [vmem:[#allocation2 + $0x418] sm:$0xff] %v156_v0  ;;  %v284_v0 = vld [vmem:[%s5216_s3 + $0x400] sm:$0xff] }
  0x43   :  { %159 = vst [vmem:[#allocation2 + $0x70] sm:$0xff] %v158_v1  ;;  %v286_v1 = vld [vmem:[%s5216_s3 + $0x408] sm:$0xff] }
  0x44   :  { %161 = vst [vmem:[#allocation2 + $0x270] sm:$0xff] %v160_v2  ;;  %v288_v2 = vld [vmem:[%s5216_s3 + $0x410] sm:$0xff] }
  0x45   :  { %163 = vst [vmem:[#allocation2 + $0x200] sm:$0xff] %v162_v3  ;;  %v290_v3 = vld [vmem:[%s5216_s3 + $0x418] sm:$0xff] }
  0x46   :  { %165 = vst [vmem:[#allocation2 + $0x1a0] sm:$0xff] %v164_v4  ;;  %v292_v4 = vld [vmem:[%s5216_s3 + $0x420] sm:$0xff] }
  0x47   :  { %167 = vst [vmem:[#allocation2 + $0x140] sm:$0xff] %v166_v5  ;;  %v294_v5 = vld [vmem:[%s5216_s3 + $0x428] sm:$0xff] }
  0x48   :  { %169 = vst [vmem:[#allocation2 + $0x3a0] sm:$0xff] %v168_v6  ;;  %v296_v6 = vld [vmem:[%s5216_s3 + $0x430] sm:$0xff] }
  0x49   :  { %171 = vst [vmem:[#allocation2 + $0xf8] sm:$0xff] %v170_v7  ;;  %v298_v7 = vld [vmem:[%s5216_s3 + $0x438] sm:$0xff] }
  0x4a   :  { %173 = vst [vmem:[#allocation2 + $0x128] sm:$0xff] %v172_v8  ;;  %v300_v8 = vld [vmem:[%s5216_s3 + $0x440] sm:$0xff] }
  0x4b   :  { %175 = vst [vmem:[#allocation2 + $0x160] sm:$0xff] %v174_v9  ;;  %v302_v9 = vld [vmem:[%s5216_s3 + $0x448] sm:$0xff] }
  0x4c   :  { %177 = vst [vmem:[#allocation2 + $0x2a8] sm:$0xff] %v176_v10  ;;  %v304_v10 = vld [vmem:[%s5216_s3 + $0x450] sm:$0xff] }
  0x4d   :  { %179 = vst [vmem:[#allocation2 + $0x130] sm:$0xff] %v178_v11  ;;  %v306_v11 = vld [vmem:[%s5216_s3 + $0x458] sm:$0xff] }
  0x4e   :  { %181 = vst [vmem:[#allocation2 + $0x318] sm:$0xff] %v180_v12  ;;  %v308_v12 = vld [vmem:[%s5216_s3 + $0x460] sm:$0xff] }
  0x4f   :  { %183 = vst [vmem:[#allocation2 + $0x268] sm:$0xff] %v182_v13  ;;  %v310_v13 = vld [vmem:[%s5216_s3 + $0x468] sm:$0xff] }
  0x50   :  { %185 = vst [vmem:[#allocation2 + $0x228] sm:$0xff] %v184_v14  ;;  %v312_v14 = vld [vmem:[%s5216_s3 + $0x470] sm:$0xff] }
  0x51   :  { %187 = vst [vmem:[#allocation2 + $0x410] sm:$0xff] %v186_v15  ;;  %v314_v15 = vld [vmem:[%s5216_s3 + $0x478] sm:$0xff] }
  0x52   :  { %189 = vst [vmem:[#allocation2 + $0x210] sm:$0xff] %v188_v16 }
  0x53   :  { %191 = vst [vmem:[#allocation2 + $0x1c0] sm:$0xff] %v190_v17 }
  0x54   :  { %193 = vst [vmem:[#allocation2 + $0x358] sm:$0xff] %v192_v18 }
  0x55   :  { %195 = vst [vmem:[#allocation2 + $0x8] sm:$0xff] %v194_v19 }
  0x56   :  { %197 = vst [vmem:[#allocation2 + $0x400] sm:$0xff] %v196_v20 }
  0x57   :  { %199 = vst [vmem:[#allocation2 + $0x1b0] sm:$0xff] %v198_v21 }
  0x58   :  { %201 = vst [vmem:[#allocation2 + $0x328] sm:$0xff] %v200_v22 }
  0x59   :  { %203 = vst [vmem:[#allocation2 + $0x230] sm:$0xff] %v202_v23 }
  0x5a   :  { %205 = vst [vmem:[#allocation2 + $0xb8] sm:$0xff] %v204_v24 }
  0x5b   :  { %207 = vst [vmem:[#allocation2 + $0x468] sm:$0xff] %v206_v25 }
  0x5c   :  { %209 = vst [vmem:[#allocation2 + $0x2d0] sm:$0xff] %v208_v26 }
  0x5d   :  { %211 = vst [vmem:[#allocation2 + $0x78] sm:$0xff] %v210_v27 }
  0x5e   :  { %213 = vst [vmem:[#allocation2 + $0x2f8] sm:$0xff] %v212_v28 }
  0x5f   :  { %215 = vst [vmem:[#allocation2 + $0x218] sm:$0xff] %v214_v29 }
  0x60   :  { %217 = vst [vmem:[#allocation2 + $0x1f0] sm:$0xff] %v216_v30 }
  0x61   :  { %219 = vst [vmem:[#allocation2 + $0x178] sm:$0xff] %v218_v31 }
  0x62   :  { %221 = vst [vmem:[#allocation2 + $0x110] sm:$0xff] %v220_v32 }
  0x63   :  { %223 = vst [vmem:[#allocation2 + $0x460] sm:$0xff] %v222_v33 }
  0x64   :  { %225 = vst [vmem:[#allocation2 + $0x2a0] sm:$0xff] %v224_v34 }
  0x65   :  { %227 = vst [vmem:[#allocation2 + $0x3d8] sm:$0xff] %v226_v35 }
  0x66   :  { %229 = vst [vmem:[#allocation2 + $0xa8] sm:$0xff] %v228_v36 }
  0x67   :  { %231 = vst [vmem:[#allocation2 + $0x1d8] sm:$0xff] %v230_v37 }
  0x68   :  { %233 = vst [vmem:[#allocation2 + $0x118] sm:$0xff] %v232_v38 }
  0x69   :  { %235 = vst [vmem:[#allocation2] sm:$0xff] %v234_v39 }
  0x6a   :  { %237 = vst [vmem:[#allocation2 + $0x478] sm:$0xff] %v236_v40 }
  0x6b   :  { %239 = vst [vmem:[#allocation2 + $0x138] sm:$0xff] %v238_v41 }
  0x6c   :  { %241 = vst [vmem:[#allocation2 + $0xd8] sm:$0xff] %v240_v42 }
  0x6d   :  { %243 = vst [vmem:[#allocation2 + $0x2d8] sm:$0xff] %v242_v43 }
  0x6e   :  { %245 = vst [vmem:[#allocation2 + $0x260] sm:$0xff] %v244_v44 }
  0x6f   :  { %247 = vst [vmem:[#allocation2 + $0x3b8] sm:$0xff] %v246_v45 }
  0x70   :  { %249 = vst [vmem:[#allocation2 + $0x180] sm:$0xff] %v248_v46 }
  0x71   :  { %251 = vst [vmem:[#allocation2 + $0x28] sm:$0xff] %v250_v47 }
  0x72   :  { %253 = vst [vmem:[#allocation2 + $0x108] sm:$0xff] %v252_v48 }
  0x73   :  { %255 = vst [vmem:[#allocation2 + $0x378] sm:$0xff] %v254_v49 }
  0x74   :  { %257 = vst [vmem:[#allocation2 + $0x440] sm:$0xff] %v256_v50 }
  0x75   :  { %259 = vst [vmem:[#allocation2 + $0x158] sm:$0xff] %v258_v51 }
  0x76   :  { %261 = vst [vmem:[#allocation2 + $0x360] sm:$0xff] %v260_v52 }
  0x77   :  { %263 = vst [vmem:[#allocation2 + $0x50] sm:$0xff] %v262_v53 }
  0x78   :  { %265 = vst [vmem:[#allocation2 + $0x308] sm:$0xff] %v264_v54 }
  0x79   :  { %267 = vst [vmem:[#allocation2 + $0x340] sm:$0xff] %v266_v55 }
  0x7a   :  { %269 = vst [vmem:[#allocation2 + $0x2e0] sm:$0xff] %v268_v56 }
  0x7b   :  { %271 = vst [vmem:[#allocation2 + $0x3e8] sm:$0xff] %v270_v57 }
  0x7c   :  { %273 = vst [vmem:[#allocation2 + $0x250] sm:$0xff] %v272_v58 }
  0x7d   :  { %275 = vst [vmem:[#allocation2 + $0x1c8] sm:$0xff] %v274_v59 }
  0x7e   :  { %277 = vst [vmem:[#allocation2 + $0x190] sm:$0xff] %v276_v60 }
  0x7f   :  { %279 = vst [vmem:[#allocation2 + $0x3d0] sm:$0xff] %v278_v61 }
  0x80   :  { %281 = vst [vmem:[#allocation2 + $0xe8] sm:$0xff] %v280_v62 }
  0x81   :  { %283 = vst [vmem:[#allocation2 + $0xf0] sm:$0xff] %v282_v63 }
  0x82   :  { %285 = vst [vmem:[#allocation2 + $0x168] sm:$0xff] %v284_v0 }
  0x83   :  { %287 = vst [vmem:[#allocation2 + $0x90] sm:$0xff] %v286_v1 }
  0x84   :  { %289 = vst [vmem:[#allocation2 + $0x1e0] sm:$0xff] %v288_v2 }
  0x85   :  { %291 = vst [vmem:[#allocation2 + $0x38] sm:$0xff] %v290_v3 }
  0x86   :  { %293 = vst [vmem:[#allocation2 + $0x388] sm:$0xff] %v292_v4 }
  0x87   :  { %295 = vst [vmem:[#allocation2 + $0x430] sm:$0xff] %v294_v5 }
  0x88   :  { %297 = vst [vmem:[#allocation2 + $0x80] sm:$0xff] %v296_v6 }
  0x89   :  { %299 = vst [vmem:[#allocation2 + $0x428] sm:$0xff] %v298_v7 }
  0x8a   :  { %301 = vst [vmem:[#allocation2 + $0x238] sm:$0xff] %v300_v8 }
  0x8b   :  { %303 = vst [vmem:[#allocation2 + $0x2b8] sm:$0xff] %v302_v9 }
  0x8c   :  { %305 = vst [vmem:[#allocation2 + $0x40] sm:$0xff] %v304_v10 }
  0x8d   :  { %307 = vst [vmem:[#allocation2 + $0x150] sm:$0xff] %v306_v11 }
  0x8e   :  { %309 = vst [vmem:[#allocation2 + $0x3a8] sm:$0xff] %v308_v12 }
  0x8f   :  { %311 = vst [vmem:[#allocation2 + $0x98] sm:$0xff] %v310_v13 }
  0x90   :  { %313 = vst [vmem:[#allocation2 + $0x58] sm:$0xff] %v312_v14 }
  0x91   :  { %315 = vst [vmem:[#allocation2 + $0x188] sm:$0xff] %v314_v15 }
  0x92   :  { %321 = vsyncadd [#allocation4], 18432  ;;  %v333_v16 = vld [vmem:[%s5217_s4] sm:$0xff]  ;;  %v335_v17 = vld [vmem:[%s5217_s4 + $0x8] sm:$0xff] }
  0x93   :  { %334 = vst [vmem:[#allocation3 + $0x58] sm:$0xff] %v333_v16  ;;  %v337_v18 = vld [vmem:[%s5217_s4 + $0x10] sm:$0xff]  ;;  %v339_v19 = vld [vmem:[%s5217_s4 + $0x18] sm:$0xff]  ;;  %v341_v20 = vld [vmem:[%s5217_s4 + $0x20] sm:$0xff] }
  0x94   :  { %336 = vst [vmem:[#allocation3 + $0x8] sm:$0xff] %v335_v17  ;;  %v343_v21 = vld [vmem:[%s5217_s4 + $0x28] sm:$0xff]  ;;  %v345_v22 = vld [vmem:[%s5217_s4 + $0x30] sm:$0xff]  ;;  %v347_v23 = vld [vmem:[%s5217_s4 + $0x38] sm:$0xff] }
  0x95   :  { %338 = vst [vmem:[#allocation3 + $0x10] sm:$0xff] %v337_v18  ;;  %v349_v24 = vld [vmem:[%s5217_s4 + $0x40] sm:$0xff]  ;;  %v351_v25 = vld [vmem:[%s5217_s4 + $0x48] sm:$0xff]  ;;  %v353_v26 = vld [vmem:[%s5217_s4 + $0x50] sm:$0xff] }
  0x96   :  { %340 = vst [vmem:[#allocation3 + $0x48] sm:$0xff] %v339_v19  ;;  %v355_v27 = vld [vmem:[%s5217_s4 + $0x58] sm:$0xff] }
  0x97   :  { %342 = vst [vmem:[#allocation3 + $0x30] sm:$0xff] %v341_v20 }
  0x98   :  { %344 = vst [vmem:[#allocation3] sm:$0xff] %v343_v21 }
  0x99   :  { %346 = vst [vmem:[#allocation3 + $0x18] sm:$0xff] %v345_v22 }
  0x9a   :  { %348 = vst [vmem:[#allocation3 + $0x50] sm:$0xff] %v347_v23 }
  0x9b   :  { %350 = vst [vmem:[#allocation3 + $0x40] sm:$0xff] %v349_v24 }
  0x9c   :  { %352 = vst [vmem:[#allocation3 + $0x20] sm:$0xff] %v351_v25 }
  0x9d   :  { %354 = vst [vmem:[#allocation3 + $0x38] sm:$0xff] %v353_v26 }
  0x9e   :  { %356 = vst [vmem:[#allocation3 + $0x28] sm:$0xff] %v355_v27 }
  0x9f   :  { %362 = vsyncadd [#allocation4 + $0x1], 1536  ;;  %v3811_v28 = vld [vmem:[%s5214_s1 + $0x38] sm:$0xff]  ;;  %v3810_v30 = vld [vmem:[%s5214_s1 + $0x30] sm:$0xff]  ;;  %vm732_vm0 = vcmask 523264   ;;  %vm785_vm1 = vcmask 1041408  }
  0xa0   :  { %v3819_v29 = vld [vmem:[%s5214_s1 + $0x78] sm:$0xff]  ;;  %588 = vmatpush.bf16.msra.mxu0 %v3811_v28  ;;  %v3818_v31 = vld [vmem:[%s5214_s1 + $0x70] sm:$0xff]  ;;  %v3809_v32 = vld [vmem:[%s5214_s1 + $0x28] sm:$0xff]  ;;  %vm788_vm2 = vcmask 1043456   ;;  %vm791_vm3 = vcmask 1045504  }
  0xa1   :  { %637 = vmatpush.bf16.msra.mxu1 %v3819_v29  ;;  %v3817_v33 = vld [vmem:[%s5214_s1 + $0x68] sm:$0xff]  ;;  %v3808_v34 = vld [vmem:[%s5214_s1 + $0x20] sm:$0xff]  ;;  %v3807_v36 = vld [vmem:[%s5214_s1 + $0x18] sm:$0xff] }
  0xa2   :  { %v3816_v35 = vld [vmem:[%s5214_s1 + $0x60] sm:$0xff]  ;;  %v3815_v37 = vld [vmem:[%s5214_s1 + $0x58] sm:$0xff]  ;;  %v3806_v38 = vld [vmem:[%s5214_s1 + $0x10] sm:$0xff] }
  0xa3   :  { %v3814_v39 = vld [vmem:[%s5214_s1 + $0x50] sm:$0xff]  ;;  %v3805_v40 = vld [vmem:[%s5214_s1 + $0x8] sm:$0xff]  ;;  %v3804_v42 = vld [vmem:[%s5214_s1] sm:$0xff] }
  0xa4   :  { %589 = vmatpush.bf16.msra.mxu0 %v3810_v30  ;;  %v3813_v41 = vld [vmem:[%s5214_s1 + $0x48] sm:$0xff]  ;;  %v3812_v43 = vld [vmem:[%s5214_s1 + $0x40] sm:$0xff]  ;;  %v2967_v50 = vld [vmem:[%s5213_s0 + $0x10] sm:$0xf] }
  0xa5   :  { %638 = vmatpush.bf16.msra.mxu1 %v3818_v31  ;;  %v2959_v44 = vld [vmem:[%s5213_s0] sm:$0xf]  ;;  %v3789_v45 = vld [vmem:[%s5213_s0 + $0x4] sm:$0xf0]  ;;  %v3788_v46 = vld [vmem:[%s5213_s0 + $0x4] sm:$0xf] }
  0xa6   :  { %v2961_v47 = vld [vmem:[%s5213_s0 + $0x8] sm:$0xf0]  ;;  %v2960_v48 = vor.u32 %v3789_v45, %v2959_v44  ;;  %v3791_v51 = vld [vmem:[%s5213_s0 + $0x14] sm:$0xf0]  ;;  %v3790_v52 = vld [vmem:[%s5213_s0 + $0x14] sm:$0xf] }
  0xa7   :  { %v2964_v49 = vor.u32 %v3788_v46, %v2961_v47  ;;  %v2969_v53 = vld [vmem:[%s5213_s0 + $0x18] sm:$0xf0]  ;;  %v2968_v54 = vor.u32 %v3791_v51, %v2967_v50  ;;  %v2975_v56 = vld [vmem:[%s5213_s0 + $0x20] sm:$0xf]  ;;  %v3793_v57 = vld [vmem:[%s5213_s0 + $0x24] sm:$0xf0] }
  0xa8   :  { %590 = vmatpush.bf16.msra.mxu0 %v3809_v32  ;;  %v2972_v55 = vor.u32 %v3790_v52, %v2969_v53  ;;  %v3792_v58 = vld [vmem:[%s5213_s0 + $0x24] sm:$0xf]  ;;  %v2977_v59 = vld [vmem:[%s5213_s0 + $0x28] sm:$0xf0]  ;;  %v2976_v60 = vor.u32 %v3793_v57, %v2975_v56  ;;  %v2983_v62 = vld [vmem:[%s5213_s0 + $0x30] sm:$0xf] }
  0xa9   :  { %639 = vmatpush.bf16.msra.mxu1 %v3817_v33  ;;  %v2980_v61 = vor.u32 %v3792_v58, %v2977_v59  ;;  %v3795_v63 = vld [vmem:[%s5213_s0 + $0x34] sm:$0xf0]  ;;  %v3794_v0 = vld [vmem:[%s5213_s0 + $0x34] sm:$0xf]  ;;  %v2985_v1 = vld [vmem:[%s5213_s0 + $0x38] sm:$0xf0] }
  0xaa   :  { %v2984_v2 = vor.u32 %v3795_v63, %v2983_v62  ;;  %v2988_v3 = vor.u32 %v3794_v0, %v2985_v1  ;;  %v2991_v4 = vld [vmem:[%s5213_s0 + $0x40] sm:$0xf]  ;;  %v3797_v5 = vld [vmem:[%s5213_s0 + $0x44] sm:$0xf0]  ;;  %v3796_v6 = vld [vmem:[%s5213_s0 + $0x44] sm:$0xf] }
  0xab   :  { %v2993_v7 = vld [vmem:[%s5213_s0 + $0x48] sm:$0xf0]  ;;  %v2992_v8 = vor.u32 %v3797_v5, %v2991_v4  ;;  %v2999_v10 = vld [vmem:[%s5213_s0 + $0x50] sm:$0xf]  ;;  %v3799_v11 = vld [vmem:[%s5213_s0 + $0x54] sm:$0xf0] }
  0xac   :  { %591 = vmatpush.bf16.msra.mxu0 %v3808_v34  ;;  %v2996_v9 = vor.u32 %v3796_v6, %v2993_v7  ;;  %v3798_v12 = vld [vmem:[%s5213_s0 + $0x54] sm:$0xf]  ;;  %v3001_v13 = vld [vmem:[%s5213_s0 + $0x58] sm:$0xf0]  ;;  %v3000_v14 = vor.u32 %v3799_v11, %v2999_v10  ;;  %v3007_v16 = vld [vmem:[%s5213_s0 + $0x60] sm:$0xf] }
  0xad   :  { %640 = vmatpush.bf16.msra.mxu1 %v3816_v35  ;;  %v3004_v15 = vor.u32 %v3798_v12, %v3001_v13  ;;  %v3801_v17 = vld [vmem:[%s5213_s0 + $0x64] sm:$0xf0]  ;;  %v3800_v18 = vld [vmem:[%s5213_s0 + $0x64] sm:$0xf]  ;;  %v3009_v19 = vld [vmem:[%s5213_s0 + $0x68] sm:$0xf0] }
  0xae   :  { %v3008_v20 = vor.u32 %v3801_v17, %v3007_v16  ;;  %v3012_v21 = vor.u32 %v3800_v18, %v3009_v19  ;;  %v3015_v22 = vld [vmem:[%s5213_s0 + $0x70] sm:$0xf]  ;;  %v3803_v23 = vld [vmem:[%s5213_s0 + $0x74] sm:$0xf0]  ;;  %v3802_v24 = vld [vmem:[%s5213_s0 + $0x74] sm:$0xf] }
  0xaf   :  { %v3017_v25 = vld [vmem:[%s5213_s0 + $0x78] sm:$0xf0]  ;;  %v3016_v26 = vor.u32 %v3803_v23, %v3015_v22  ;;  %v4749_v28 = vld [vmem:[%s5215_s2] ss:$0 sm:$0xff]  ;;  %s4101_s0 = smov 64  }
  0xb0   :  { %592 = vmatpush.bf16.msra.mxu0 %v3807_v36  ;;  %v3020_v27 = vor.u32 %v3802_v24, %v3017_v25 }
  0xb1   :  { %641 = vmatpush.bf16.msra.mxu1 %v3815_v37 }
  0xb4   :  { %593 = vmatpush.bf16.msra.mxu0 %v3806_v38 }
  0xb5   :  { %642 = vmatpush.bf16.msra.mxu1 %v3814_v39 }
  0xb8   :  { %594 = vmatpush.bf16.msra.mxu0 %v3805_v40 }
  0xb9   :  { %643 = vmatpush.bf16.msra.mxu1 %v3813_v41 }
  0xbc   :  { %595 = vmatpush.bf16.msra.mxu0 %v3804_v42 }
  0xbd   :  { %644 = vmatpush.bf16.msra.mxu1 %v3812_v43 }
  0xbf   :  { %596 = vmatmul.bf16.vlgmr.msra.gmra.mxu0 %v2960_v48 }
  0xc0   :  { %645 = vmatmul.bf16.vlgmr.msra.gmra.mxu1 %v2964_v49 }
  0xcf   :  { %601 = vmatmul.bf16.gmra.mxu0 %v2968_v54 }
  0xd0   :  { %650 = vmatmul.bf16.gmra.mxu1 %v2972_v55 }
  0xdf   :  { %606 = vmatmul.bf16.gmra.mxu0 %v2976_v60 }
  0xe0   :  { %655 = vmatmul.bf16.gmra.mxu1 %v2980_v61 }
  0xef   :  { %611 = vmatmul.bf16.gmra.mxu0 %v2984_v2 }
  0xf0   :  { %660 = vmatmul.bf16.gmra.mxu1 %v2988_v3 }
  0xff   :  { %616 = vmatmul.bf16.gmra.mxu0 %v2992_v8 }
 0x100   :  { %665 = vmatmul.bf16.gmra.mxu1 %v2996_v9 }
 0x10f   :  { %621 = vmatmul.bf16.gmra.mxu0 %v3000_v14 }
 0x110   :  { %670 = vmatmul.bf16.gmra.mxu1 %v3004_v15 }
 0x11f   :  { %626 = vmatmul.bf16.gmra.mxu0 %v3008_v20 }
 0x120   :  { %675 = vmatmul.bf16.gmra.mxu1 %v3012_v21 }
 0x12f   :  { %631 = vmatmul.bf16.gmra.mxu0 %v3016_v26 }
 0x130   :  { %680 = vmatmul.bf16.gmra.mxu1 %v3020_v27 }
 0x13c   :  { %v597_v29 = vpop.f32.mrf.mxu0 }
 0x13d   :  { %v646_v30 = vpop.f32.mrf.mxu1  ;;  %v598_v31 = vadd.f32 %v597_v29, %v4749_v28 }
 0x13f   :  { %v647_v32 = vadd.f32 %v646_v30, %v598_v31 }
 0x141   :  { %v686_v41 = vmax.f32 %v647_v32, 0.0 }
 0x144   :  { %v599_v33 = vpop.f32.mrf.mxu0 }
 0x145   :  { %v648_v34 = vpop.f32.mrf.mxu1  ;;  %v600_v35 = vadd.f32 %v599_v33, %v4749_v28 }
 0x147   :  { %v649_v36 = vadd.f32 %v648_v34, %v600_v35 }
 0x149   :  { %v687_v48 = vmax.f32 %v649_v36, 0.0 }
 0x14c   :  { %v602_v37 = vpop.f32.mrf.mxu0 }
 0x14d   :  { %v651_v38 = vpop.f32.mrf.mxu1  ;;  %v603_v39 = vadd.f32 %v602_v37, %v4749_v28 }
 0x14f   :  { %v652_v40 = vadd.f32 %v651_v38, %v603_v39 }
 0x151   :  { %v688_v42 = vmax.f32 %v652_v40, 0.0 }
 0x153   :  { %v4754_v43 = vmax.f32 %v686_v41, %v688_v42 }
 0x154   :  { %v604_v44 = vpop.f32.mrf.mxu0 }
 0x155   :  { %v653_v45 = vpop.f32.mrf.mxu1  ;;  %v605_v46 = vadd.f32 %v604_v44, %v4749_v28 }
 0x157   :  { %v654_v47 = vadd.f32 %v653_v45, %v605_v46 }
 0x159   :  { %v689_v49 = vmax.f32 %v654_v47, 0.0 }
 0x15b   :  { %v4757_v50 = vmax.f32 %v687_v48, %v689_v49 }
 0x15c   :  { %v607_v51 = vpop.f32.mrf.mxu0 }
 0x15d   :  { %v656_v52 = vpop.f32.mrf.mxu1  ;;  %v608_v55 = vadd.f32 %v607_v51, %v4749_v28 }
 0x15f   :  { %v657_v58 = vadd.f32 %v656_v52, %v608_v55 }
 0x161   :  { %v690_v61 = vmax.f32 %v657_v58, 0.0 }
 0x164   :  { %v609_v53 = vpop.f32.mrf.mxu0 }
 0x165   :  { %v658_v54 = vpop.f32.mrf.mxu1  ;;  %v610_v62 = vadd.f32 %v609_v53, %v4749_v28 }
 0x167   :  { %v659_v3 = vadd.f32 %v658_v54, %v610_v62 }
 0x169   :  { %v691_v7 = vmax.f32 %v659_v3, 0.0 }
 0x16c   :  { %v612_v56 = vpop.f32.mrf.mxu0 }
 0x16d   :  { %v661_v57 = vpop.f32.mrf.mxu1  ;;  %v613_v59 = vadd.f32 %v612_v56, %v4749_v28 }
 0x16f   :  { %v662_v60 = vadd.f32 %v661_v57, %v613_v59 }
 0x171   :  { %v692_v63 = vmax.f32 %v662_v60, 0.0 }
 0x173   :  { %v704_v0 = vmax.f32 %v690_v61, %v692_v63 }
 0x174   :  { %v614_v1 = vpop.f32.mrf.mxu0 }
 0x175   :  { %v663_v2 = vpop.f32.mrf.mxu1  ;;  %v615_v4 = vadd.f32 %v614_v1, %v4749_v28  ;;  %v706_v5 = vmax.f32 %v704_v0, %v688_v42 }
 0x177   :  { %v664_v6 = vadd.f32 %v663_v2, %v615_v4  ;;  %718 = vrot.lane.b32.xlu0 %v706_v5, %s4101_s0 }
 0x179   :  { %v693_v8 = vmax.f32 %v664_v6, 0.0 }
 0x17b   :  { %v705_v9 = vmax.f32 %v691_v7, %v693_v8 }
 0x17c   :  { %v617_v10 = vpop.f32.mrf.mxu0 }
 0x17d   :  { %v666_v11 = vpop.f32.mrf.mxu1  ;;  %v618_v12 = vadd.f32 %v617_v10, %v4749_v28  ;;  %v707_v13 = vmax.f32 %v705_v9, %v689_v49 }
 0x17f   :  { %v667_v14 = vadd.f32 %v666_v11, %v618_v12  ;;  %720 = vrot.lane.b32.xlu1 %v707_v13, %s4101_s0 }
 0x181   :  { %v694_v23 = vmax.f32 %v667_v14, 0.0 }
 0x184   :  { %v619_v15 = vpop.f32.mrf.mxu0 }
 0x185   :  { %v668_v16 = vpop.f32.mrf.mxu1  ;;  %v620_v17 = vadd.f32 %v619_v15, %v4749_v28 }
 0x187   :  { %v669_v18 = vadd.f32 %v668_v16, %v620_v17 }
 0x189   :  { %v695_v32 = vmax.f32 %v669_v18, 0.0 }
 0x18c   :  { %v622_v19 = vpop.f32.mrf.mxu0 }
 0x18d   :  { %v671_v20 = vpop.f32.mrf.mxu1  ;;  %v623_v21 = vadd.f32 %v622_v19, %v4749_v28 }
 0x18f   :  { %v672_v22 = vadd.f32 %v671_v20, %v623_v21 }
 0x191   :  { %v696_v24 = vmax.f32 %v672_v22, 0.0 }
 0x193   :  { %v708_v25 = vmax.f32 %v694_v23, %v696_v24 }
 0x194   :  { %v624_v26 = vpop.f32.mrf.mxu0 }
 0x195   :  { %v673_v27 = vpop.f32.mrf.mxu1  ;;  %v710_v29 = vmax.f32 %v708_v25, %v692_v63  ;;  %v625_v30 = vadd.f32 %v624_v26, %v4749_v28 }
 0x197   :  { %v674_v31 = vadd.f32 %v673_v27, %v625_v30 }
 0x199   :  { %v697_v33 = vmax.f32 %v674_v31, 0.0 }
 0x19b   :  { %v709_v34 = vmax.f32 %v695_v32, %v697_v33 }
 0x19c   :  { %v627_v35 = vpop.f32.mrf.mxu0 }
 0x19d   :  { %v676_v36 = vpop.f32.mrf.mxu1  ;;  %v711_v37 = vmax.f32 %v709_v34, %v693_v8  ;;  %v628_v40 = vadd.f32 %v627_v35, %v4749_v28 }
 0x19f   :  { %v677_v44 = vadd.f32 %v676_v36, %v628_v40 }
 0x1a1   :  { %v698_v47 = vmax.f32 %v677_v44, 0.0 }
 0x1a4   :  { %v629_v38 = vpop.f32.mrf.mxu0 }
 0x1a5   :  { %v678_v39 = vpop.f32.mrf.mxu1  ;;  %v630_v48 = vadd.f32 %v629_v38, %v4749_v28 }
 0x1a7   :  { %v679_v53 = vadd.f32 %v678_v39, %v630_v48 }
 0x1a9   :  { %v699_v58 = vmax.f32 %v679_v53, 0.0 }
 0x1ac   :  { %v632_v41 = vpop.f32.mrf.mxu0 }
 0x1ad   :  { %v681_v42 = vpop.f32.mrf.mxu1  ;;  %v633_v45 = vadd.f32 %v632_v41, %v4749_v28 }
 0x1af   :  { %v682_v46 = vadd.f32 %v681_v42, %v633_v45 }
 0x1b1   :  { %v700_v49 = vmax.f32 %v682_v46, 0.0 }
 0x1b3   :  { %v712_v51 = vmax.f32 %v698_v47, %v700_v49 }
 0x1b4   :  { %v634_v52 = vpop.f32.mrf.mxu0 }
 0x1b5   :  { %v635_v54 = vadd.f32 %v634_v52, %v4749_v28  ;;  %v714_v55 = vmax.f32 %v712_v51, %v696_v24  ;;  %v683_v56 = vpop.f32.mrf.mxu1 }
 0x1b7   :  { %v684_v57 = vadd.f32 %v683_v56, %v635_v54  ;;  %726 = vrot.lane.b32.xlu0 %v714_v55, %s4101_s0 }
 0x1b9   :  { %v701_v59 = vmax.f32 %v684_v57, 0.0 }
 0x1bb   :  { %v713_v60 = vmax.f32 %v699_v58, %v701_v59 }
 0x1bd   :  { %v715_v61 = vmax.f32 %v713_v60, %v697_v33 }
 0x1bf   :  { %728 = vrot.lane.b32.xlu1 %v715_v61, %s4101_s0 }
 0x1e9   :  { %v719_v62 = vpop.permute.xlu0 %718 }
 0x1ea   :  { %v733_v63 = vsel %vm732_vm0, %v4754_v43, %v719_v62 }
 0x1eb   :  { %v739_v0 = vrot.slane %v733_v63, 2  ;;  %v745_v2 = vrot.slane %v733_v63, 6 }
 0x1ed   :  { %v743_v1 = vmax.f32 %v733_v63, %v739_v0 }
 0x1ef   :  { %v749_v3 = vmax.f32 %v743_v1, %v745_v2 }
 0x1f1   :  { %v721_v28 = vpop.permute.xlu1 %720  ;;  %v769_v8 = vrot.slane %v749_v3, 2 }
 0x1f2   :  { %v734_v4 = vsel %vm732_vm0, %v4757_v50, %v721_v28 }
 0x1f3   :  { %v753_v5 = vrot.slane %v734_v4, 2  ;;  %v761_v7 = vrot.slane %v734_v4, 6  ;;  %v786_v43 = vsel %vm785_vm1, %v743_v1, %v769_v8 }
 0x1f5   :  { %v757_v6 = vmax.f32 %v734_v4, %v753_v5 }
 0x1f7   :  { %v759_v9 = vmax.f32 %v757_v6, %v745_v2  ;;  %v765_v10 = vmax.f32 %v757_v6, %v761_v7 }
 0x1f9   :  { %v775_v11 = vrot.slane %v759_v9, 4  ;;  %v781_v12 = vrot.slane %v765_v10, 6 }
 0x1fb   :  { %v789_v13 = vsel %vm788_vm2, %v786_v43, %v775_v11 }
 0x1fc   :  { %v4782_v14 = vsel %vm791_vm3, %v789_v13, %v781_v12 }
 0x229   :  { %v727_v15 = vpop.permute.xlu0 %726 }
 0x22a   :  { %v735_v50 = vsel %vm732_vm0, %v710_v29, %v727_v15 }
 0x22b   :  { %v740_v16 = vrot.slane %v735_v50, 2  ;;  %v746_v18 = vrot.slane %v735_v50, 6 }
 0x22d   :  { %v744_v17 = vmax.f32 %v735_v50, %v740_v16 }
 0x22f   :  { %v750_v20 = vmax.f32 %v744_v17, %v746_v18 }
 0x231   :  { %v729_v19 = vpop.permute.xlu1 %728  ;;  %v770_v25 = vrot.slane %v750_v20, 2 }
 0x232   :  { %v736_v21 = vsel %vm732_vm0, %v711_v37, %v729_v19 }
 0x233   :  { %v754_v22 = vrot.slane %v736_v21, 2  ;;  %v762_v24 = vrot.slane %v736_v21, 6  ;;  %v787_v32 = vsel %vm785_vm1, %v744_v17, %v770_v25 }
 0x235   :  { %v758_v23 = vmax.f32 %v736_v21, %v754_v22 }
 0x237   :  { %v760_v26 = vmax.f32 %v758_v23, %v746_v18  ;;  %v766_v27 = vmax.f32 %v758_v23, %v762_v24 }
 0x239   :  { %v776_v30 = vrot.slane %v760_v26, 4  ;;  %v782_v31 = vrot.slane %v766_v27, 6 }
 0x23b   :  { %v790_v33 = vsel %vm788_vm2, %v787_v32, %v776_v30 }
 0x23c   :  { %v4789_v29 = vsel %vm791_vm3, %v790_v33, %v782_v31 }
 0x23d   :  { %4095 = dma.done.wait [#allocation4], 18432 }
 0x23e   :  { %4096 = vsyncadd [#allocation4], 4294948864  ;;  %v3979_v34 = vpack.i.bf16 %v4789_v29, %v4782_v14 }
 0x23f   :  { %4097 = dma.done.wait [#allocation4 + $0x1], 1536 }
 0x240   :  { %4098 = vsyncadd [#allocation4 + $0x1], 4294965760  ;;  %3980 = vrot.lane.b32.xlu0 %v3979_v34, %s4101_s0  ;;  %v3827_v58 = vld [vmem:[#allocation2 + $0x100] sm:$0xff]  ;;  %v3826_v59 = vld [vmem:[#allocation2 + $0x370] sm:$0xff]  ;;  %vm4102_vm5 = vmmov 1   ;;  %s4103_s28 = smov [#allocation5]  }
 0x241   :  { %1185 = vmatpush.bf16.msra.mxu2 %v3827_v58  ;;  %v3835_v60 = vld [vmem:[#allocation2 + $0x148] sm:$0xff]  ;;  %v3825_v61 = vld [vmem:[#allocation2 + $0x438] sm:$0xff]  ;;  %v3834_v62 = vld [vmem:[#allocation2 + $0x30] sm:$0xff]  ;;  %s2925_s29 = sshll.u32 %s4103_s28, 4  ;;  %s2927_s7 = sshll.u32 %s5218_s5, 4  ;;  %s2926_s29 = int_to_ptr.vmem [resolvable:$true] %s2925_s29  ;;  %s2928_s7 = int_to_ptr.hbm [resolvable:$true] %s2927_s7 }
 0x242   :  { %1204 = vmatpush.bf16.msra.mxu3 %v3835_v60  ;;  %v3824_v63 = vld [vmem:[#allocation2 + $0x320] sm:$0xff]  ;;  %v3823_v1 = vld [vmem:[#allocation2 + $0x448] sm:$0xff]  ;;  %v3822_v28 = vld [vmem:[#allocation2 + $0x10] sm:$0xff] }
 0x243   :  { %v3833_v0 = vld [vmem:[#allocation2 + $0xc0] sm:$0xff]  ;;  %v3832_v2 = vld [vmem:[#allocation2 + $0x48] sm:$0xff]  ;;  %v3821_v4 = vld [vmem:[#allocation2 + $0x3b0] sm:$0xff] }
 0x244   :  { %v3831_v3 = vld [vmem:[#allocation2 + $0x380] sm:$0xff]  ;;  %v3830_v5 = vld [vmem:[#allocation2 + $0x290] sm:$0xff]  ;;  %v3842_v10 = vld [vmem:[#allocation2 + $0x1a8] sm:$0xff] }
 0x245   :  { %1186 = vmatpush.bf16.msra.mxu2 %v3826_v59  ;;  %v3820_v6 = vld [vmem:[#allocation2 + $0x2b0] sm:$0xff]  ;;  %v3828_v9 = vld [vmem:[#allocation2 + $0x300] sm:$0xff]  ;;  %v3851_v11 = vld [vmem:[#allocation2 + $0x68] sm:$0xff] }
 0x246   :  { %1205 = vmatpush.bf16.msra.mxu3 %v3834_v62  ;;  %v3829_v7 = vld [vmem:[#allocation2 + $0x2f0] sm:$0xff]  ;;  %v3841_v12 = vld [vmem:[#allocation2 + $0x3e0] sm:$0xff]  ;;  %v3850_v43 = vld [vmem:[#allocation2 + $0x458] sm:$0xff] }
 0x247   :  { %v3843_v8 = vld [vmem:[#allocation2 + $0x450] sm:$0xff]  ;;  %v3840_v13 = vld [vmem:[#allocation2 + $0x368] sm:$0xff]  ;;  %v3839_v50 = vld [vmem:[#allocation2 + $0xe0] sm:$0xff] }
 0x248   :  { %v3849_v15 = vld [vmem:[#allocation2 + $0x390] sm:$0xff]  ;;  %v3848_v16 = vld [vmem:[#allocation2 + $0x240] sm:$0xff]  ;;  %v3838_v17 = vld [vmem:[#allocation2 + $0x348] sm:$0xff] }
 0x249   :  { %1187 = vmatpush.bf16.msra.mxu2 %v3825_v61  ;;  %v3847_v18 = vld [vmem:[#allocation2 + $0xc8] sm:$0xff]  ;;  %v3846_v21 = vld [vmem:[#allocation2 + $0x350] sm:$0xff]  ;;  %vm3229_vm4 = vmneg %vm785_vm1 }
 0x24a   :  { %1206 = vmatpush.bf16.msra.mxu3 %v3833_v0  ;;  %v3837_v19 = vld [vmem:[#allocation2 + $0x88] sm:$0xff]  ;;  %v3845_v26 = vld [vmem:[#allocation2 + $0x398] sm:$0xff]  ;;  %vm4846_vm6 = vmpackc.low %vm4102_vm5, %vm3229_vm4 }
 0x24b   :  { %v3836_v23 = vld [vmem:[#allocation2 + $0x208] sm:$0xff]  ;;  %v3855_v33 = vld [vmem:[#allocation2 + $0x170] sm:$0xff]  ;;  %v3844_v34 = vld [vmem:[#allocation2 + $0x420] sm:$0xff] }
 0x24c   :  { %v3852_v59 = vld [vmem:[#allocation2 + $0x470] sm:$0xff]  ;;  %vm4872_vm7 = vmpackc.low %vm4102_vm5, %vm791_vm3 }
 0x24d   :  { %1188 = vmatpush.bf16.msra.mxu2 %v3824_v63  ;;  %vm4883_vm8 = vmpackc.low %vm732_vm0, %vm4102_vm5 }
 0x24e   :  { %1207 = vmatpush.bf16.msra.mxu3 %v3832_v2 }
 0x251   :  { %1189 = vmatpush.bf16.msra.mxu2 %v3823_v1 }
 0x252   :  { %1208 = vmatpush.bf16.msra.mxu3 %v3831_v3 }
 0x255   :  { %1190 = vmatpush.bf16.msra.mxu2 %v3822_v28  ;;  %v2346_v28 = vld [vmem:[%s5215_s2 + $0x4] ss:$0 sm:$0xff] }
 0x256   :  { %1209 = vmatpush.bf16.msra.mxu3 %v3830_v5 }
 0x259   :  { %1191 = vmatpush.bf16.msra.mxu2 %v3821_v4 }
 0x25a   :  { %1210 = vmatpush.bf16.msra.mxu3 %v3829_v7 }
 0x25d   :  { %1192 = vmatpush.bf16.msra.mxu2 %v3820_v6 }
 0x25e   :  { %1211 = vmatpush.bf16.msra.mxu3 %v3828_v9 }
 0x261   :  { %1223 = vmatpush.bf16.msrb.mxu2 %v3843_v8 }
 0x262   :  { %1242 = vmatpush.bf16.msrb.mxu3 %v3851_v11 }
 0x265   :  { %1224 = vmatpush.bf16.msrb.mxu2 %v3842_v10 }
 0x266   :  { %1243 = vmatpush.bf16.msrb.mxu3 %v3850_v43 }
 0x269   :  { %1225 = vmatpush.bf16.msrb.mxu2 %v3841_v12 }
 0x26a   :  { %1244 = vmatpush.bf16.msrb.mxu3 %v3849_v15 }
 0x26d   :  { %1226 = vmatpush.bf16.msrb.mxu2 %v3840_v13 }
 0x26e   :  { %1245 = vmatpush.bf16.msrb.mxu3 %v3848_v16 }
 0x271   :  { %1227 = vmatpush.bf16.msrb.mxu2 %v3839_v50 }
 0x272   :  { %1246 = vmatpush.bf16.msrb.mxu3 %v3847_v18 }
 0x275   :  { %1228 = vmatpush.bf16.msrb.mxu2 %v3838_v17 }
 0x276   :  { %1247 = vmatpush.bf16.msrb.mxu3 %v3846_v21 }
 0x279   :  { %1229 = vmatpush.bf16.msrb.mxu2 %v3837_v19 }
 0x27a   :  { %1248 = vmatpush.bf16.msrb.mxu3 %v3845_v26 }
 0x27d   :  { %1230 = vmatpush.bf16.msrb.mxu2 %v3836_v23 }
 0x27e   :  { %1249 = vmatpush.bf16.msrb.mxu3 %v3844_v34 }
 0x2b2   :  { %v3981_v35 = vpop.permute.xlu0 %3980 }
 0x2b3   :  { %v4794_v36 = vunpack.i.h.bf16 %v3981_v35  ;;  %v3982_v37 = vunpack.i.l.bf16 %v3981_v35 }
 0x2b5   :  { %v4798_v38 = vsel %vm732_vm0, %v3982_v37, %v4794_v36  ;;  %v4801_v39 = vsel %vm732_vm0, 0.0, %v3982_v37  ;;  %v886_v40 = vsel %vm732_vm0, %v4794_v36, 0.0 }
 0x2b6   :  { %934 = vrot.lane.b32.xlu2 %v886_v40, %s4101_s0  ;;  %v891_v41 = vrot.slane %v886_v40, 6  ;;  %v889_v42 = vrot.slane %v4801_v39, 6  ;;  %v890_v44 = vrot.slane %v4798_v38, 6  ;;  %v898_v45 = vrot.slane %v4801_v39, 2 }
 0x2b7   :  { %v899_v46 = vrot.slane %v4798_v38, 2  ;;  %v900_v55 = vrot.slane %v886_v40, 2  ;;  %v3989_v56 = vpack.i.bf16 %v4798_v38, %v4801_v39 }
 0x2b8   :  { %v4811_v47 = vsel %vm785_vm1, 0.0, %v891_v41  ;;  %v895_v48 = vsel %vm785_vm1, 0.0, %v889_v42  ;;  %v4819_v49 = vsel %vm785_vm1, 0.0, %v890_v44  ;;  %v904_v52 = vsel %vm791_vm3, %v898_v45, 0.0 }
 0x2b9   :  { %941 = vrot.lane.b32.xlu1 %v4811_v47, %s4101_s0  ;;  %v3984_v51 = vpack.i.bf16 %v4819_v49, %v895_v48  ;;  %v4830_v53 = vsel %vm791_vm3, %v899_v46, 0.0  ;;  %v4839_v57 = vsel %vm791_vm3, %v900_v55, 0.0  ;;  %v3853_v55 = vld [vmem:[#allocation2 + $0x298] sm:$0xff] }
 0x2ba   :  { %v3994_v54 = vpack.i.bf16 %v4830_v53, %v904_v52 }
 0x2bb   :  { %3985 = vrot.lane.b32.xlu0 %v3984_v51, %s4101_s0 }
 0x2be   :  { %3995 = vrot.lane.b32.xlu2 %v3994_v54, %s4101_s0 }
 0x2c1   :  { %3990 = vrot.lane.b32.xlu1 %v3989_v56, %s4101_s0 }
 0x2c3   :  { %947 = vrot.lane.b32.xlu0 %v4839_v57, %s4101_s0 }
 0x310   :  { %v935_v54 = vpop.permute.xlu2 %934 }
 0x318   :  { %v3996_v60 = vpop.permute.xlu2 %3995 }
 0x319   :  { %v3997_v62 = vunpack.i.l.bf16 %v3996_v60 }
 0x32b   :  { %v942_v20 = vpop.permute.xlu1 %941 }
 0x32c   :  { %v952_v56 = vsel %vm732_vm0, %v942_v20, %v4798_v38 }
 0x32d   :  { %v3986_v22 = vpop.permute.xlu0 %3985 }
 0x32e   :  { %v3988_v24 = vunpack.i.h.bf16 %v3986_v22  ;;  %v3987_v25 = vunpack.i.l.bf16 %v3986_v22 }
 0x330   :  { %v921_v27 = vsel %vm732_vm0, %v3987_v25, %v3988_v24  ;;  %v933_v40 = vsel %vm732_vm0, %v3988_v24, %v4801_v39  ;;  %v943_v48 = vsel %vm732_vm0, %v3988_v24, %v942_v20 }
 0x331   :  { %v3231_v31 = vpack.c.bf16 %v921_v27, %v889_v42  ;;  %v3854_v42 = vld [vmem:[#allocation2 + $0x278] sm:$0xff]  ;;  %v3235_v52 = vpack.c.bf16 %v943_v48, %v890_v44  ;;  %v3998_v44 = vunpack.i.h.bf16 %v3996_v60 }
 0x333   :  { %v3991_v32 = vpop.permute.xlu1 %3990  ;;  %3232 = vmatmul.msk.bf16.vlgmr.msra.gmra.mxu2 %vm4846_vm6, %v3231_v31  ;;  %v930_v0 = vsel %vm732_vm0, %v3997_v62, %v3998_v44  ;;  %v957_v5 = vpack.c.bf16 %v3998_v44, %v4830_v53 }
 0x334   :  { %v3992_v35 = vunpack.i.l.bf16 %v3991_v32  ;;  %1265 = vmatpush.bf16.msra.mxu2 %v3855_v33  ;;  %v3993_v51 = vunpack.i.h.bf16 %v3991_v32  ;;  %v3241_v1 = vpack.c.bf16 %v930_v0, %v898_v45 }
 0x335   :  { %v948_v3 = vpop.permute.xlu0 %947 }
 0x336   :  { %v914_v37 = vsel %vm732_vm0, %v4819_v49, %v3992_v35  ;;  %v939_v49 = vsel %vm732_vm0, %v4811_v47, %v3993_v51  ;;  %v911_v61 = vsel %vm732_vm0, %v3992_v35, %v3993_v51  ;;  %v936_v2 = vsel %vm732_vm0, %v3993_v51, %v935_v54 }
 0x337   :  { %v954_v41 = vpack.c.bf16 %v933_v40, %v914_v37  ;;  %v959_v58 = vpack.c.bf16 %v952_v56, %v939_v49  ;;  %v955_v63 = vpack.c.bf16 %v4798_v38, %v911_v61  ;;  %v3238_v4 = vpack.c.bf16 %v4794_v36, %v936_v2  ;;  %v874_v36 = vld [vmem:[%s5215_s2 + $0x1] ss:$0 sm:$0xff] }
 0x338   :  { %1266 = vmatpush.bf16.msra.mxu2 %v3854_v42  ;;  %v949_v39 = vsel %vm732_vm0, %v3998_v44, %v948_v3  ;;  %v962_v6 = vpack.c.bf16 %v948_v3, %v4839_v57 }
 0x339   :  { %1212 = vmatmul.bf16.vlgmr.msra.gmra.mxu3 %v954_v41  ;;  %v3244_v45 = vpack.c.bf16 %v949_v39, %v899_v46 }
 0x33c   :  { %1267 = vmatpush.bf16.msra.mxu2 %v3853_v55 }
 0x340   :  { %1268 = vmatpush.bf16.msra.mxu2 %v3852_v59 }
 0x343   :  { %3236 = vmatmul.msk.bf16.gmra.mxu2 %vm4846_vm6, %v3235_v52 }
 0x349   :  { %1217 = vmatmul.bf16.gmra.mxu3 %v959_v58 }
 0x353   :  { %1231 = vmatmul.bf16.vlgmr.msrb.gmra.mxu2 %v955_v63 }
 0x359   :  { %3242 = vmatmul.msk.bf16.vlgmr.msrb.gmra.mxu3 %vm4872_vm7, %v3241_v1 }
 0x363   :  { %3239 = vmatmul.msk.bf16.gmra.mxu2 %vm4883_vm8, %v3238_v4 }
 0x369   :  { %3245 = vmatmul.msk.bf16.gmra.mxu3 %vm4872_vm7, %v3244_v45 }
 0x373   :  { %3246 = vmatmul.msk.bf16.vlgmr.msra.gmra.mxu2 %vm732_vm0, %v957_v5 }
 0x383   :  { %3247 = vmatmul.msk.bf16.gmra.mxu2 %vm732_vm0, %v962_v6 }
 0x3b6   :  { %v1194_v7 = vpop.f32.mrf.mxu2 }
 0x3b7   :  { %v1195_v8 = vadd.f32 %v1194_v7, %v874_v36 }
 0x3bc   :  { %v1213_v9 = vpop.f32.mrf.mxu3 }
 0x3bd   :  { %v1214_v38 = vadd.f32 %v1213_v9, %v1195_v8 }
 0x3be   :  { %v1196_v46 = vpop.f32.mrf.mxu2 }
 0x3bf   :  { %v1197_v32 = vadd.f32 %v1196_v46, %v874_v36 }
 0x3c4   :  { %v1215_v10 = vpop.f32.mrf.mxu3 }
 0x3c5   :  { %v1216_v35 = vadd.f32 %v1215_v10, %v1197_v32  ;;  %v3866_v32 = vld [vmem:[#allocation2 + $0x258] sm:$0xff] }
 0x3c6   :  { %v1199_v11 = vpop.f32.mrf.mxu2 }
 0x3c7   :  { %v1200_v12 = vadd.f32 %v1199_v11, %v874_v36 }
 0x3cc   :  { %v1218_v43 = vpop.f32.mrf.mxu3 }
 0x3cd   :  { %v1219_v53 = vadd.f32 %v1218_v43, %v1200_v12 }
 0x3ce   :  { %v1201_v13 = vpop.f32.mrf.mxu2 }
 0x3cf   :  { %v1202_v33 = vadd.f32 %v1201_v13, %v874_v36 }
 0x3d4   :  { %v1220_v15 = vpop.f32.mrf.mxu3 }
 0x3d5   :  { %v1221_v37 = vadd.f32 %v1220_v15, %v1202_v33  ;;  %v3863_v15 = vld [vmem:[#allocation2 + $0x18] sm:$0xff]  ;;  %v3857_v33 = vld [vmem:[#allocation2 + $0xb0] sm:$0xff] }
 0x3d6   :  { %v1232_v50 = vpop.f32.mrf.mxu2  ;;  %1675 = vmatpush.bf16.msra.mxu3 %v3863_v15 }
 0x3d7   :  { %v1233_v57 = vadd.f32 %v1232_v50, %v1214_v38  ;;  %v3871_v50 = vld [vmem:[#allocation2 + $0x3f0] sm:$0xff] }
 0x3d8   :  { %1694 = vmatpush.bf16.msrb.mxu2 %v3871_v50 }
 0x3dc   :  { %v1251_v16 = vpop.f32.mrf.mxu3 }
 0x3dd   :  { %v1252_v17 = vadd.f32 %v1251_v16, %v1233_v57  ;;  %v3862_v57 = vld [vmem:[#allocation2 + $0x3c8] sm:$0xff]  ;;  %v3870_v16 = vld [vmem:[#allocation2 + $0x3f8] sm:$0xff] }
 0x3de   :  { %v1234_v18 = vpop.f32.mrf.mxu2  ;;  %1676 = vmatpush.bf16.msra.mxu3 %v3862_v57  ;;  %1695 = vmatpush.bf16.msrb.mxu2 %v3870_v16 }
 0x3df   :  { %v1235_v41 = vadd.f32 %v1234_v18, %v1216_v35  ;;  %v3869_v18 = vld [vmem:[#allocation2 + $0x2c0] sm:$0xff] }
 0x3e0   :  { %v3883_v35 = vld [vmem:[#allocation2 + $0x3c0] sm:$0xff] }
 0x3e2   :  { %1696 = vmatpush.bf16.msrb.mxu2 %v3869_v18 }
 0x3e4   :  { %v1253_v19 = vpop.f32.mrf.mxu3 }
 0x3e5   :  { %v1254_v48 = vadd.f32 %v1253_v19, %v1235_v41  ;;  %v3887_v19 = vld [vmem:[#allocation2 + $0x200] sm:$0xff] }
 0x3e6   :  { %v1237_v20 = vpop.f32.mrf.mxu2  ;;  %1732 = vmatpush.bf16.msrb.mxu0 %v3887_v19  ;;  %v3864_v41 = vld [vmem:[#allocation2 + $0xa0] sm:$0xff] }
 0x3e7   :  { %v1238_v21 = vadd.f32 %v1237_v20, %v1219_v53  ;;  %v3886_v20 = vld [vmem:[#allocation2 + $0x270] sm:$0xff] }
 0x3ea   :  { %1733 = vmatpush.bf16.msrb.mxu0 %v3886_v20 }
 0x3ec   :  { %v1256_v22 = vpop.f32.mrf.mxu3 }
 0x3ed   :  { %v1257_v23 = vadd.f32 %v1256_v22, %v1238_v21  ;;  %v3860_v21 = vld [vmem:[#allocation2 + $0x1f8] sm:$0xff]  ;;  %v3868_v22 = vld [vmem:[#allocation2 + $0x408] sm:$0xff] }
 0x3ee   :  { %v1239_v24 = vpop.f32.mrf.mxu2  ;;  %1697 = vmatpush.bf16.msrb.mxu2 %v3868_v22 }
 0x3ef   :  { %v1240_v42 = vadd.f32 %v1239_v24, %v1221_v37  ;;  %v3885_v24 = vld [vmem:[#allocation2 + $0x70] sm:$0xff]  ;;  %v3890_v37 = vld [vmem:[#allocation2 + $0x3a0] sm:$0xff] }
 0x3f0   :  { %1734 = vmatpush.bf16.msrb.mxu0 %v3885_v24 }
 0x3f4   :  { %v1258_v40 = vpop.f32.mrf.mxu3 }
 0x3f5   :  { %v1259_v51 = vadd.f32 %v1258_v40, %v1240_v42  ;;  %v3856_v40 = vld [vmem:[#allocation2 + $0x198] sm:$0xff]  ;;  %v3882_v42 = vld [vmem:[#allocation2 + $0x2c8] sm:$0xff] }
 0x3f6   :  { %v1270_v25 = vpop.f32.mrf.mxu2 }
 0x3f7   :  { %v1271_v26 = vadd.f32 %v1270_v25, %v1252_v17  ;;  %v3861_v17 = vld [vmem:[#allocation2 + $0x60] sm:$0xff]  ;;  %v3859_v25 = vld [vmem:[#allocation2 + $0x1e8] sm:$0xff] }
 0x3f8   :  { %1677 = vmatpush.bf16.msra.mxu3 %v3861_v17 }
 0x3fc   :  { %1678 = vmatpush.bf16.msra.mxu3 %v3860_v21 }
 0x3fe   :  { %v1272_v27 = vpop.f32.mrf.mxu2 }
 0x3ff   :  { %v1273_v54 = vadd.f32 %v1272_v27, %v1254_v48  ;;  %v3884_v27 = vld [vmem:[#allocation2 + $0x418] sm:$0xff]  ;;  %v3879_v48 = vld [vmem:[#allocation2 + $0x288] sm:$0xff] }
 0x400   :  { %1679 = vmatpush.bf16.msra.mxu3 %v3859_v25  ;;  %1735 = vmatpush.bf16.msrb.mxu0 %v3884_v27 }
 0x404   :  { %1736 = vmatpush.bf16.msrb.mxu0 %v3883_v35 }
 0x406   :  { %v1275_v31 = vpop.f32.mrf.mxu2 }
 0x407   :  { %v1276_v34 = vadd.f32 %v1275_v31, %v1257_v23  ;;  %v3891_v23 = vld [vmem:[#allocation2 + $0xf8] sm:$0xff]  ;;  %v3858_v31 = vld [vmem:[#allocation2 + $0x20] sm:$0xff] }
 0x408   :  { %1755 = vmatpush.bf16.msrb.mxu1 %v3891_v23  ;;  %1680 = vmatpush.bf16.msra.mxu3 %v3858_v31 }
 0x409   :  { %1737 = vmatpush.bf16.msrb.mxu0 %v3882_v42 }
 0x40c   :  { %1681 = vmatpush.bf16.msra.mxu3 %v3857_v33  ;;  %1756 = vmatpush.bf16.msrb.mxu1 %v3890_v37 }
 0x40e   :  { %v1277_v52 = vpop.f32.mrf.mxu2 }
 0x40f   :  { %v1278_v55 = vadd.f32 %v1277_v52, %v1259_v51  ;;  %v3889_v51 = vld [vmem:[#allocation2 + $0x140] sm:$0xff] }
 0x410   :  { %1682 = vmatpush.bf16.msra.mxu3 %v3856_v40  ;;  %v3881_v52 = vld [vmem:[#allocation2 + $0x120] sm:$0xff]  ;;  %1757 = vmatpush.bf16.msrb.mxu1 %v3889_v51 }
 0x411   :  { %v3999_v49 = vpack.i.bf16 %v1278_v55, %v1273_v54  ;;  %1738 = vmatpush.bf16.msrb.mxu0 %v3881_v52  ;;  %v3888_v54 = vld [vmem:[#allocation2 + $0x1a0] sm:$0xff] }
 0x412   :  { %v3878_v55 = vld [vmem:[#allocation2 + $0x280] sm:$0xff] }
 0x413   :  { %4000 = vrot.lane.b32.xlu1 %v3999_v49, %s4101_s0  ;;  %v3880_v49 = vld [vmem:[#allocation2 + $0x2e8] sm:$0xff] }
 0x414   :  { %1713 = vmatpush.bf16.msrb.mxu3 %v3879_v48  ;;  %1758 = vmatpush.bf16.msrb.mxu1 %v3888_v54 }
 0x415   :  { %1739 = vmatpush.bf16.msrb.mxu0 %v3880_v49 }
 0x418   :  { %1714 = vmatpush.bf16.msrb.mxu3 %v3878_v55 }
 0x485   :  { %v4001_v56 = vpop.permute.xlu1 %4000 }
 0x486   :  { %v4003_v58 = vunpack.i.h.bf16 %v4001_v56  ;;  %v4002_v59 = vunpack.i.l.bf16 %v4001_v56  ;;  %v3877_v56 = vld [vmem:[#allocation2 + $0x310] sm:$0xff] }
 0x487   :  { %1715 = vmatpush.bf16.msrb.mxu3 %v3877_v56 }
 0x488   :  { %v1288_v60 = vsel %vm732_vm0, %v1271_v26, %v4002_v59  ;;  %v1289_v61 = vsel %vm732_vm0, %v1276_v34, %v4003_v58  ;;  %v3867_v26 = vld [vmem:[#allocation2 + $0xd0] sm:$0xff]  ;;  %v3876_v58 = vld [vmem:[#allocation2 + $0x1b8] sm:$0xff]  ;;  %v3875_v59 = vld [vmem:[#allocation2 + $0x220] sm:$0xff] }
 0x489   :  { %v1290_v44 = vmax.f32 %v1288_v60, 0.0  ;;  %v1291_v62 = vmax.f32 %v1289_v61, 0.0  ;;  %1698 = vmatpush.bf16.msrb.mxu2 %v3867_v26  ;;  %v3865_v34 = vld [vmem:[#allocation2 + $0x1d0] sm:$0xff] }
 0x48a   :  { %v3874_v60 = vld [vmem:[#allocation2 + $0x330] sm:$0xff] }
 0x48b   :  { %v4004_v63 = vpack.i.bf16 %v1291_v62, %v1290_v44  ;;  %1716 = vmatpush.bf16.msrb.mxu3 %v3876_v58  ;;  %v3873_v44 = vld [vmem:[#allocation2 + $0x248] sm:$0xff] }
 0x48d   :  { %4005 = vrot.lane.b32.xlu2 %v4004_v63, %s4101_s0  ;;  %1699 = vmatpush.bf16.msrb.mxu2 %v3866_v32 }
 0x48f   :  { %1717 = vmatpush.bf16.msrb.mxu3 %v3875_v59 }
 0x491   :  { %1700 = vmatpush.bf16.msrb.mxu2 %v3865_v34 }
 0x493   :  { %1718 = vmatpush.bf16.msrb.mxu3 %v3874_v60 }
 0x495   :  { %1701 = vmatpush.bf16.msrb.mxu2 %v3864_v41 }
 0x497   :  { %1719 = vmatpush.bf16.msrb.mxu3 %v3873_v44 }
 0x4e7   :  { %v4006_v0 = vpop.permute.xlu2 %4005 }
 0x4e8   :  { %v4906_v1 = vunpack.i.h.bf16 %v4006_v0  ;;  %v4007_v2 = vunpack.i.l.bf16 %v4006_v0 }
 0x4ea   :  { %v4910_v3 = vsel %vm732_vm0, %v4007_v2, %v4906_v1  ;;  %v4913_v4 = vsel %vm732_vm0, 0.0, %v4007_v2  ;;  %v1376_v39 = vsel %vm732_vm0, %v4906_v1, 0.0 }
 0x4eb   :  { %v4014_v45 = vpack.i.bf16 %v4910_v3, %v4913_v4  ;;  %v1381_v5 = vrot.slane %v1376_v39, 6  ;;  %v1379_v6 = vrot.slane %v4913_v4, 6  ;;  %v1380_v36 = vrot.slane %v4910_v3, 6 }
 0x4ec   :  { %v1388_v46 = vrot.slane %v4913_v4, 2  ;;  %v1389_v10 = vrot.slane %v4910_v3, 2  ;;  %v1390_v11 = vrot.slane %v1376_v39, 2 }
 0x4ed   :  { %4015 = vrot.lane.b32.xlu2 %v4014_v45, %s4101_s0  ;;  %v4923_v7 = vsel %vm785_vm1, 0.0, %v1381_v5  ;;  %v1385_v8 = vsel %vm785_vm1, 0.0, %v1379_v6  ;;  %v4931_v9 = vsel %vm785_vm1, 0.0, %v1380_v36 }
 0x4ee   :  { %1431 = vrot.lane.b32.xlu1 %v4923_v7, %s4101_s0  ;;  %v4009_v38 = vpack.i.bf16 %v4931_v9, %v1385_v8  ;;  %v1394_v12 = vsel %vm791_vm3, %v1388_v46, 0.0  ;;  %v4945_v43 = vsel %vm791_vm3, %v1389_v10, 0.0  ;;  %v4948_v53 = vsel %vm791_vm3, %v1390_v11, 0.0 }
 0x4ef   :  { %v4019_v13 = vpack.i.bf16 %v4945_v43, %v1394_v12 }
 0x4f0   :  { %4010 = vrot.lane.b32.xlu0 %v4009_v38, %s4101_s0 }
 0x4f5   :  { %1437 = vrot.lane.b32.xlu2 %v4948_v53, %s4101_s0 }
 0x4f6   :  { %1424 = vrot.lane.b32.xlu1 %v1376_v39, %s4101_s0  ;;  %v3872_v39 = vld [vmem:[#allocation2 + $0x338] sm:$0xff] }
 0x4f7   :  { %1720 = vmatpush.bf16.msrb.mxu3 %v3872_v39 }
 0x4f8   :  { %4020 = vrot.lane.b32.xlu0 %v4019_v13, %s4101_s0 }
 0x547   :  { %v4016_v61 = vpop.permute.xlu2 %4015 }
 0x548   :  { %v4017_v62 = vunpack.i.l.bf16 %v4016_v61 }
 0x54a   :  { %v1404_v45 = vsel %vm732_vm0, %v4931_v9, %v4017_v62 }
 0x560   :  { %v1432_v16 = vpop.permute.xlu1 %1431 }
 0x561   :  { %v1442_v17 = vsel %vm732_vm0, %v1432_v16, %v4910_v3 }
 0x562   :  { %v4011_v63 = vpop.permute.xlu0 %4010 }
 0x563   :  { %v4013_v0 = vunpack.i.h.bf16 %v4011_v63  ;;  %v4012_v2 = vunpack.i.l.bf16 %v4011_v63 }
 0x565   :  { %v1423_v5 = vsel %vm732_vm0, %v4013_v0, %v4913_v4  ;;  %v1411_v8 = vsel %vm732_vm0, %v4012_v2, %v4013_v0  ;;  %v1433_v18 = vsel %vm732_vm0, %v4013_v0, %v1432_v16 }
 0x566   :  { %v1444_v38 = vpack.c.bf16 %v1423_v5, %v1404_v45  ;;  %v3394_v11 = vpack.c.bf16 %v1411_v8, %v1379_v6  ;;  %v4018_v6 = vunpack.i.h.bf16 %v4016_v61 }
 0x568   :  { %3395 = vmatmul.msk.bf16.vlgmr.msra.gmra.mxu3 %vm4846_vm6, %v3394_v11  ;;  %1702 = vmatmul.bf16.vlgmr.msrb.gmra.mxu2 %v1444_v38  ;;  %v1429_v19 = vsel %vm732_vm0, %v4923_v7, %v4018_v6  ;;  %v1425_v23 = vpop.permute.xlu1 %1424 }
 0x569   :  { %v1449_v4 = vpack.c.bf16 %v1442_v17, %v1429_v19  ;;  %v1426_v24 = vsel %vm732_vm0, %v4018_v6, %v1425_v23 }
 0x56a   :  { %v4021_v12 = vpop.permute.xlu0 %4020  ;;  %v3401_v25 = vpack.c.bf16 %v4906_v1, %v1426_v24 }
 0x56b   :  { %v4023_v13 = vunpack.i.h.bf16 %v4021_v12  ;;  %v4022_v15 = vunpack.i.l.bf16 %v4021_v12 }
 0x56d   :  { %v1420_v50 = vsel %vm732_vm0, %v4022_v15, %v4023_v13  ;;  %v1447_v9 = vpack.c.bf16 %v4023_v13, %v4945_v43  ;;  %v3398_v43 = vpack.c.bf16 %v1433_v18, %v1380_v36  ;;  %v1401_v36 = vsel %vm732_vm0, %v4017_v62, %v4018_v6 }
 0x56e   :  { %v3404_v57 = vpack.c.bf16 %v1420_v50, %v1388_v46  ;;  %v1438_v46 = vpop.permute.xlu2 %1437  ;;  %v1445_v7 = vpack.c.bf16 %v4910_v3, %v1401_v36 }
 0x56f   :  { %3409 = vmatmul.msk.bf16.vlgmr.msrb.gmra.mxu1 %vm732_vm0, %v1447_v9  ;;  %v1439_v20 = vsel %vm732_vm0, %v4023_v13, %v1438_v46  ;;  %v1452_v21 = vpack.c.bf16 %v1438_v46, %v4948_v53 }
 0x570   :  { %3405 = vmatmul.msk.bf16.vlgmr.msrb.gmra.mxu0 %vm4872_vm7, %v3404_v57  ;;  %v3407_v22 = vpack.c.bf16 %v1439_v20, %v1389_v10  ;;  %v1364_v10 = vld [vmem:[%s5215_s2 + $0x2] ss:$0 sm:$0xff] }
 0x578   :  { %3399 = vmatmul.msk.bf16.gmra.mxu3 %vm4846_vm6, %v3398_v43  ;;  %1707 = vmatmul.bf16.gmra.mxu2 %v1449_v4 }
 0x57f   :  { %3410 = vmatmul.msk.bf16.gmra.mxu1 %vm732_vm0, %v1452_v21 }
 0x580   :  { %3408 = vmatmul.msk.bf16.gmra.mxu0 %vm4872_vm7, %v3407_v22 }
 0x588   :  { %1721 = vmatmul.bf16.vlgmr.msrb.gmra.mxu3 %v1445_v7 }
 0x598   :  { %3402 = vmatmul.msk.bf16.gmra.mxu3 %vm4883_vm8, %v3401_v25 }
 0x5eb   :  { %v1684_v53 = vpop.f32.mrf.mxu3  ;;  %v1703_v26 = vpop.f32.mrf.mxu2 }
 0x5ec   :  { %v1685_v27 = vadd.f32 %v1684_v53, %v1364_v10  ;;  %v1760_v1 = vpop.f32.mrf.mxu1 }
 0x5ed   :  { %v1741_v41 = vpop.f32.mrf.mxu0 }
 0x5ee   :  { %v1704_v31 = vadd.f32 %v1703_v26, %v1685_v27 }
 0x5f3   :  { %v1686_v32 = vpop.f32.mrf.mxu3  ;;  %v1705_v33 = vpop.f32.mrf.mxu2 }
 0x5f4   :  { %v1687_v51 = vadd.f32 %v1686_v32, %v1364_v10  ;;  %v1762_v56 = vpop.f32.mrf.mxu1 }
 0x5f5   :  { %v1743_v55 = vpop.f32.mrf.mxu0 }
 0x5f6   :  { %v1706_v49 = vadd.f32 %v1705_v33, %v1687_v51  ;;  %v3915_v51 = vld [vmem:[#allocation2 + $0x178] sm:$0xff] }
 0x5f7   :  { %2205 = vmatpush.bf16.msra.mxu0 %v3915_v51 }
 0x5fb   :  { %v1689_v3 = vpop.f32.mrf.mxu3  ;;  %v1708_v35 = vpop.f32.mrf.mxu2 }
 0x5fc   :  { %v1690_v34 = vadd.f32 %v1689_v3, %v1364_v10  ;;  %v1765_v0 = vpop.f32.mrf.mxu1 }
 0x5fd   :  { %v1746_v44 = vpop.f32.mrf.mxu0 }
 0x5fe   :  { %v1709_v37 = vadd.f32 %v1708_v35, %v1690_v34 }
 0x603   :  { %v1691_v40 = vpop.f32.mrf.mxu3  ;;  %v1710_v5 = vpop.f32.mrf.mxu2 }
 0x604   :  { %v1692_v2 = vadd.f32 %v1691_v40, %v1364_v10  ;;  %v1767_v15 = vpop.f32.mrf.mxu1  ;;  %v3907_v40 = vld [vmem:[#allocation2 + $0x230] sm:$0xff] }
 0x605   :  { %v1748_v12 = vpop.f32.mrf.mxu0  ;;  %2186 = vmatpush.bf16.msra.mxu3 %v3907_v40 }
 0x606   :  { %v1711_v8 = vadd.f32 %v1710_v5, %v1692_v2  ;;  %v3893_v2 = vld [vmem:[#allocation2 + $0x160] sm:$0xff]  ;;  %v3919_v5 = vld [vmem:[#allocation2 + $0x3d8] sm:$0xff] }
 0x60b   :  { %v1722_v42 = vpop.f32.mrf.mxu3 }
 0x60c   :  { %v1723_v48 = vadd.f32 %v1722_v42, %v1704_v31  ;;  %v3897_v42 = vld [vmem:[#allocation2 + $0x268] sm:$0xff] }
 0x60e   :  { %v1742_v52 = vadd.f32 %v1741_v41, %v1723_v48  ;;  %v3898_v41 = vld [vmem:[#allocation2 + $0x228] sm:$0xff]  ;;  %v3905_v48 = vld [vmem:[#allocation2 + $0x1b0] sm:$0xff] }
 0x610   :  { %v1761_v54 = vadd.f32 %v1760_v1, %v1742_v52  ;;  %v3906_v1 = vld [vmem:[#allocation2 + $0x328] sm:$0xff]  ;;  %v3923_v52 = vld [vmem:[#allocation2] sm:$0xff] }
 0x611   :  { %2187 = vmatpush.bf16.msra.mxu3 %v3906_v1  ;;  %2224 = vmatpush.bf16.msra.mxu1 %v3923_v52 }
 0x613   :  { %v1724_v58 = vpop.f32.mrf.mxu3 }
 0x614   :  { %v1725_v59 = vadd.f32 %v1724_v58, %v1706_v49  ;;  %v3914_v49 = vld [vmem:[#allocation2 + $0x1f0] sm:$0xff] }
 0x615   :  { %2188 = vmatpush.bf16.msra.mxu3 %v3905_v48  ;;  %v3895_v58 = vld [vmem:[#allocation2 + $0x130] sm:$0xff]  ;;  %2206 = vmatpush.bf16.msra.mxu0 %v3914_v49 }
 0x616   :  { %v1744_v60 = vadd.f32 %v1743_v55, %v1725_v59  ;;  %v3904_v55 = vld [vmem:[#allocation2 + $0x400] sm:$0xff]  ;;  %v3903_v59 = vld [vmem:[#allocation2 + $0x8] sm:$0xff] }
 0x618   :  { %v1763_v61 = vadd.f32 %v1762_v56, %v1744_v60  ;;  %v3922_v56 = vld [vmem:[#allocation2 + $0x118] sm:$0xff] }
 0x619   :  { %2189 = vmatpush.bf16.msra.mxu3 %v3904_v55  ;;  %2225 = vmatpush.bf16.msra.mxu1 %v3922_v56  ;;  %v3913_v60 = vld [vmem:[#allocation2 + $0x218] sm:$0xff] }
 0x61a   :  { %1771 = vrot.lane.b32.xlu0 %v1763_v61, %s4101_s0  ;;  %v3921_v61 = vld [vmem:[#allocation2 + $0x1d8] sm:$0xff]  ;;  %2207 = vmatpush.bf16.msra.mxu0 %v3913_v60 }
 0x61b   :  { %v1727_v62 = vpop.f32.mrf.mxu3 }
 0x61c   :  { %v1728_v63 = vadd.f32 %v1727_v62, %v1709_v37  ;;  %v3899_v37 = vld [vmem:[#allocation2 + $0x410] sm:$0xff]  ;;  %v3902_v62 = vld [vmem:[#allocation2 + $0x358] sm:$0xff] }
 0x61d   :  { %2167 = vmatpush.bf16.msra.mxu2 %v3899_v37  ;;  %2190 = vmatpush.bf16.msra.mxu3 %v3903_v59 }
 0x61e   :  { %v1747_v39 = vadd.f32 %v1746_v44, %v1728_v63  ;;  %v3894_v44 = vld [vmem:[#allocation2 + $0x2a8] sm:$0xff]  ;;  %2226 = vmatpush.bf16.msra.mxu1 %v3921_v61  ;;  %v3912_v63 = vld [vmem:[#allocation2 + $0x2f8] sm:$0xff] }
 0x61f   :  { %2208 = vmatpush.bf16.msra.mxu0 %v3912_v63 }
 0x620   :  { %v1766_v45 = vadd.f32 %v1765_v0, %v1747_v39  ;;  %v3920_v0 = vld [vmem:[#allocation2 + $0xa8] sm:$0xff]  ;;  %v3901_v39 = vld [vmem:[#allocation2 + $0x1c0] sm:$0xff] }
 0x621   :  { %2168 = vmatpush.bf16.msra.mxu2 %v3898_v41  ;;  %2191 = vmatpush.bf16.msra.mxu3 %v3902_v62 }
 0x622   :  { %2227 = vmatpush.bf16.msra.mxu1 %v3920_v0 }
 0x623   :  { %v1729_v38 = vpop.f32.mrf.mxu3 }
 0x624   :  { %v1730_v11 = vadd.f32 %v1729_v38, %v1711_v8  ;;  %v3892_v8 = vld [vmem:[#allocation2 + $0x128] sm:$0xff]  ;;  %v3900_v38 = vld [vmem:[#allocation2 + $0x210] sm:$0xff] }
 0x625   :  { %2169 = vmatpush.bf16.msra.mxu2 %v3897_v42  ;;  %2192 = vmatpush.bf16.msra.mxu3 %v3901_v39 }
 0x626   :  { %v1749_v13 = vadd.f32 %v1748_v12, %v1730_v11  ;;  %2228 = vmatpush.bf16.msra.mxu1 %v3919_v5  ;;  %v3910_v11 = vld [vmem:[#allocation2 + $0x2d0] sm:$0xff]  ;;  %v3918_v12 = vld [vmem:[#allocation2 + $0x2a0] sm:$0xff] }
 0x628   :  { %v1768_v50 = vadd.f32 %v1767_v15, %v1749_v13  ;;  %v3927_v13 = vld [vmem:[#allocation2 + $0x2d8] sm:$0xff]  ;;  %v3909_v15 = vld [vmem:[#allocation2 + $0x468] sm:$0xff] }
 0x629   :  { %2193 = vmatpush.bf16.msra.mxu3 %v3900_v38 }
 0x62a   :  { %1775 = vrot.lane.b32.xlu1 %v1768_v50, %s4101_s0  ;;  %2229 = vmatpush.bf16.msra.mxu1 %v3918_v12  ;;  %v3917_v50 = vld [vmem:[#allocation2 + $0x460] sm:$0xff] }
 0x62e   :  { %2230 = vmatpush.bf16.msra.mxu1 %v3917_v50 }
 0x68c   :  { %v1772_v9 = vpop.permute.xlu0 %1771 }
 0x68d   :  { %v1778_v57 = vsel %vm732_vm0, %v1761_v54, %v1772_v9  ;;  %v3896_v54 = vld [vmem:[#allocation2 + $0x318] sm:$0xff] }
 0x68e   :  { %v5000_v16 = vadd.f32 %v1778_v57, %v4782_v14  ;;  %2170 = vmatpush.bf16.msra.mxu2 %v3896_v54  ;;  %v3908_v9 = vld [vmem:[#allocation2 + $0xb8] sm:$0xff]  ;;  %v3916_v57 = vld [vmem:[#allocation2 + $0x110] sm:$0xff] }
 0x68f   :  { %2231 = vmatpush.bf16.msra.mxu1 %v3916_v57 }
 0x690   :  { %v1782_v19 = vmax.f32 %v5000_v16, 0.0  ;;  %v3964_v16 = vld [vmem:[#allocation3 + $0x58] sm:$0xff] }
 0x692   :  { %2171 = vmatpush.bf16.msra.mxu2 %v3895_v58 }
 0x696   :  { %2172 = vmatpush.bf16.msra.mxu2 %v3894_v44 }
 0x69a   :  { %2173 = vmatpush.bf16.msra.mxu2 %v3893_v2 }
 0x69c   :  { %v1776_v6 = vpop.permute.xlu1 %1775 }
 0x69d   :  { %v1779_v17 = vsel %vm732_vm0, %v1766_v45, %v1776_v6  ;;  %v3911_v45 = vld [vmem:[#allocation2 + $0x78] sm:$0xff] }
 0x69e   :  { %v5004_v18 = vadd.f32 %v1779_v17, %v4789_v29  ;;  %2209 = vmatpush.bf16.msra.mxu0 %v3911_v45  ;;  %2174 = vmatpush.bf16.msra.mxu2 %v3892_v8  ;;  %v3926_v6 = vld [vmem:[#allocation2 + $0xd8] sm:$0xff] }
 0x69f   :  { %v3925_v17 = vld [vmem:[#allocation2 + $0x138] sm:$0xff] }
 0x6a0   :  { %v1783_v43 = vmax.f32 %v5004_v18, 0.0  ;;  %v3971_v18 = vld [vmem:[#allocation3 + $0x50] sm:$0xff] }
 0x6a2   :  { %v4024_v4 = vpack.i.bf16 %v1783_v43, %v1782_v19  ;;  %2210 = vmatpush.bf16.msra.mxu0 %v3910_v11  ;;  %2247 = vmatpush.bf16.msrb.mxu2 %v3927_v13 }
 0x6a4   :  { %4025 = vrot.lane.b32.xlu2 %v4024_v4, %s4101_s0  ;;  %v3924_v4 = vld [vmem:[#allocation2 + $0x478] sm:$0xff] }
 0x6a6   :  { %2211 = vmatpush.bf16.msra.mxu0 %v3909_v15  ;;  %2248 = vmatpush.bf16.msrb.mxu2 %v3926_v6 }
 0x6aa   :  { %2212 = vmatpush.bf16.msra.mxu0 %v3908_v9  ;;  %2249 = vmatpush.bf16.msrb.mxu2 %v3925_v17 }
 0x6ae   :  { %2250 = vmatpush.bf16.msrb.mxu2 %v3924_v4 }
 0x6fe   :  { %v4026_v46 = vpop.permute.xlu2 %4025 }
 0x6ff   :  { %v5013_v14 = vunpack.i.h.bf16 %v4026_v46  ;;  %v4027_v20 = vunpack.i.l.bf16 %v4026_v46 }
 0x701   :  { %v5017_v21 = vsel %vm732_vm0, %v4027_v20, %v5013_v14  ;;  %v5020_v29 = vsel %vm732_vm0, 0.0, %v4027_v20  ;;  %v1868_v22 = vsel %vm732_vm0, %v5013_v14, 0.0 }
 0x702   :  { %1889 = vrot.lane.b32.xlu2 %v5020_v29, %s4101_s0  ;;  %v1873_v36 = vrot.slane %v1868_v22, 6  ;;  %v1871_v7 = vrot.slane %v5020_v29, 6  ;;  %v1872_v23 = vrot.slane %v5017_v21, 6  ;;  %v1882_v24 = vrot.slane %v1868_v22, 2 }
 0x703   :  { %v1881_v31 = vrot.slane %v5017_v21, 2  ;;  %v1880_v33 = vrot.slane %v5020_v29, 2 }
 0x704   :  { %v5029_v25 = vsel %vm785_vm1, 0.0, %v1873_v36  ;;  %v1877_v10 = vsel %vm785_vm1, 0.0, %v1871_v7  ;;  %v5037_v53 = vsel %vm785_vm1, 0.0, %v1872_v23  ;;  %v5043_v27 = vsel %vm791_vm3, %v1882_v24, 0.0 }
 0x705   :  { %1923 = vrot.lane.b32.xlu1 %v5029_v25, %s4101_s0  ;;  %v4029_v26 = vpack.i.bf16 %v5037_v53, %v1877_v10  ;;  %v4039_v32 = vpack.i.bf16 %v1868_v22, %v5043_v27  ;;  %v5053_v3 = vsel %vm791_vm3, %v1881_v31, 0.0  ;;  %v1886_v34 = vsel %vm791_vm3, %v1880_v33, 0.0 }
 0x706   :  { %v4034_v35 = vpack.i.bf16 %v5017_v21, %v5053_v3 }
 0x707   :  { %4030 = vrot.lane.b32.xlu0 %v4029_v26, %s4101_s0 }
 0x70a   :  { %4040 = vrot.lane.b32.xlu2 %v4039_v32, %s4101_s0 }
 0x70d   :  { %1908 = vrot.lane.b32.xlu1 %v1886_v34, %s4101_s0 }
 0x70f   :  { %4035 = vrot.lane.b32.xlu0 %v4034_v35, %s4101_s0 }
 0x75c   :  { %v1890_v46 = vpop.permute.xlu2 %1889 }
 0x75d   :  { %v1896_v10 = vsel %vm732_vm0, %v5037_v53, %v1890_v46 }
 0x764   :  { %v4041_v55 = vpop.permute.xlu2 %4040 }
 0x765   :  { %v4042_v56 = vunpack.i.l.bf16 %v4041_v55 }
 0x767   :  { %v1944_v61 = vpack.c.bf16 %v4042_v56, %v5043_v27 }
 0x777   :  { %v1924_v20 = vpop.permute.xlu1 %1923 }
 0x778   :  { %v1934_v54 = vsel %vm732_vm0, %v1924_v20, %v5017_v21 }
 0x779   :  { %v4031_v22 = vpop.permute.xlu0 %4030 }
 0x77a   :  { %v4033_v36 = vunpack.i.h.bf16 %v4031_v22  ;;  %v4032_v24 = vunpack.i.l.bf16 %v4031_v22 }
 0x77c   :  { %v1915_v26 = vsel %vm732_vm0, %v4033_v36, %v5020_v29  ;;  %v1903_v32 = vsel %vm732_vm0, %v4032_v24, %v4033_v36 }
 0x77d   :  { %v1936_v34 = vpack.c.bf16 %v1915_v26, %v1896_v10  ;;  %v3557_v35 = vpack.c.bf16 %v1903_v32, %v1871_v7  ;;  %v1925_v7 = vsel %vm732_vm0, %v4033_v36, %v1924_v20 }
 0x77e   :  { %v3561_v49 = vpack.c.bf16 %v1925_v7, %v1872_v23 }
 0x77f   :  { %3558 = vmatmul.msk.bf16.vlgmr.msra.gmra.mxu2 %vm4846_vm6, %v3557_v35  ;;  %2194 = vmatmul.bf16.vlgmr.msra.gmra.mxu3 %v1936_v34  ;;  %v1909_v1 = vpop.permute.xlu1 %1908 }
 0x781   :  { %v4036_v37 = vpop.permute.xlu0 %4035 }
 0x782   :  { %v4038_v40 = vunpack.i.h.bf16 %v4036_v37  ;;  %v4037_v41 = vunpack.i.l.bf16 %v4036_v37 }
 0x784   :  { %v1912_v42 = vsel %vm732_vm0, %v1909_v1, %v4037_v41  ;;  %v1893_v53 = vsel %vm732_vm0, %v1890_v46, %v4038_v40  ;;  %v1921_v52 = vsel %vm732_vm0, %v5029_v25, %v4038_v40  ;;  %v1931_v59 = vsel %vm732_vm0, %v4037_v41, %v4042_v56  ;;  %v3935_v56 = vld [vmem:[#allocation2 + $0x158] sm:$0xff] }
 0x785   :  { %v3567_v48 = vpack.c.bf16 %v1912_v42, %v1880_v33  ;;  %v1937_v51 = vpack.c.bf16 %v5017_v21, %v1893_v53  ;;  %v1941_v29 = vpack.c.bf16 %v1934_v54, %v1921_v52  ;;  %v4043_v33 = vunpack.i.h.bf16 %v4041_v55  ;;  %2657 = vmatpush.bf16.msrb.mxu3 %v3935_v56 }
 0x786   :  { %v3570_v60 = vpack.c.bf16 %v1931_v59, %v1881_v31  ;;  %v1939_v23 = vpack.c.bf16 %v4037_v41, %v5053_v3  ;;  %v3951_v59 = vld [vmem:[#allocation2 + $0x38] sm:$0xff] }
 0x787   :  { %2213 = vmatmul.bf16.vlgmr.msra.gmra.mxu0 %v1937_v51  ;;  %3568 = vmatmul.msk.bf16.vlgmr.msra.gmra.mxu1 %vm4872_vm7, %v3567_v48  ;;  %v1918_v58 = vsel %vm732_vm0, %v4038_v40, %v4043_v33 }
 0x788   :  { %v3564_v25 = vpack.c.bf16 %v5013_v14, %v1918_v58  ;;  %v1856_v14 = vld [vmem:[%s5215_s2 + $0x3] ss:$0 sm:$0xff]  ;;  %v3943_v58 = vld [vmem:[#allocation2 + $0x1c8] sm:$0xff]  ;;  %2695 = vmatpush.bf16.msrb.mxu1 %v3951_v59 }
 0x789   :  { %2676 = vmatpush.bf16.msrb.mxu0 %v3943_v58  ;;  %v3960_v59 = vld [vmem:[#allocation2 + $0x3a8] sm:$0xff] }
 0x78f   :  { %3562 = vmatmul.msk.bf16.gmra.mxu2 %vm4846_vm6, %v3561_v49  ;;  %2199 = vmatmul.bf16.gmra.mxu3 %v1941_v29 }
 0x797   :  { %3565 = vmatmul.msk.bf16.gmra.mxu0 %vm4883_vm8, %v3564_v25  ;;  %3571 = vmatmul.msk.bf16.gmra.mxu1 %vm4872_vm7, %v3570_v60  ;;  %v3934_v25 = vld [vmem:[#allocation2 + $0x440] sm:$0xff]  ;;  %v3942_v60 = vld [vmem:[#allocation2 + $0x250] sm:$0xff] }
 0x798   :  { %2658 = vmatpush.bf16.msrb.mxu3 %v3934_v25  ;;  %2677 = vmatpush.bf16.msrb.mxu0 %v3942_v60 }
 0x79f   :  { %3572 = vmatmul.msk.bf16.vlgmr.msrb.gmra.mxu2 %vm732_vm0, %v1939_v23  ;;  %v3950_v23 = vld [vmem:[#allocation2 + $0x1e0] sm:$0xff] }
 0x7a0   :  { %2696 = vmatpush.bf16.msrb.mxu1 %v3950_v23 }
 0x7af   :  { %3573 = vmatmul.msk.bf16.gmra.mxu2 %vm732_vm0, %v1944_v61  ;;  %v3959_v61 = vld [vmem:[#allocation2 + $0x150] sm:$0xff] }
 0x7b0   :  { %2714 = vmatpush.bf16.msra.mxu2 %v3959_v61 }
 0x802   :  { %v2176_v21 = vpop.f32.mrf.mxu2  ;;  %v2195_v31 = vpop.f32.mrf.mxu3 }
 0x803   :  { %v2177_v44 = vadd.f32 %v2176_v21, %v1856_v14  ;;  %v3941_v21 = vld [vmem:[#allocation2 + $0x3e8] sm:$0xff] }
 0x804   :  { %v2214_v62 = vpop.f32.mrf.mxu0  ;;  %v2233_v63 = vpop.f32.mrf.mxu1  ;;  %2678 = vmatpush.bf16.msrb.mxu0 %v3941_v21 }
 0x805   :  { %v2196_v0 = vadd.f32 %v2195_v31, %v2177_v44  ;;  %v3949_v31 = vld [vmem:[#allocation2 + $0x90] sm:$0xff]  ;;  %v3932_v44 = vld [vmem:[#allocation2 + $0x108] sm:$0xff] }
 0x806   :  { %2697 = vmatpush.bf16.msrb.mxu1 %v3949_v31 }
 0x807   :  { %v2215_v2 = vadd.f32 %v2214_v62, %v2196_v0  ;;  %v3940_v62 = vld [vmem:[#allocation2 + $0x2e0] sm:$0xff] }
 0x808   :  { %2679 = vmatpush.bf16.msrb.mxu0 %v3940_v62 }
 0x809   :  { %v2234_v39 = vadd.f32 %v2233_v63, %v2215_v2  ;;  %v3948_v63 = vld [vmem:[#allocation2 + $0x168] sm:$0xff] }
 0x80a   :  { %v2178_v45 = vpop.f32.mrf.mxu2  ;;  %v2197_v3 = vpop.f32.mrf.mxu3  ;;  %v3931_v2 = vld [vmem:[#allocation2 + $0x28] sm:$0xff]  ;;  %2698 = vmatpush.bf16.msrb.mxu1 %v3948_v63 }
 0x80b   :  { %v2179_v46 = vadd.f32 %v2178_v45, %v1856_v14 }
 0x80c   :  { %v2216_v5 = vpop.f32.mrf.mxu0  ;;  %v2235_v8 = vpop.f32.mrf.mxu1 }
 0x80d   :  { %v2198_v36 = vadd.f32 %v2197_v3, %v2179_v46  ;;  %v3939_v3 = vld [vmem:[#allocation2 + $0x340] sm:$0xff] }
 0x80e   :  { %2680 = vmatpush.bf16.msrb.mxu0 %v3939_v3 }
 0x80f   :  { %v2217_v34 = vadd.f32 %v2216_v5, %v2198_v36  ;;  %v3947_v5 = vld [vmem:[#allocation2 + $0xf0] sm:$0xff]  ;;  %v3929_v36 = vld [vmem:[#allocation2 + $0x3b8] sm:$0xff] }
 0x810   :  { %2699 = vmatpush.bf16.msrb.mxu1 %v3947_v5 }
 0x811   :  { %v2236_v40 = vadd.f32 %v2235_v8, %v2217_v34  ;;  %v3938_v34 = vld [vmem:[#allocation2 + $0x308] sm:$0xff] }
 0x812   :  { %v2181_v38 = vpop.f32.mrf.mxu2  ;;  %v2200_v11 = vpop.f32.mrf.mxu3  ;;  %2681 = vmatpush.bf16.msrb.mxu0 %v3938_v34 }
 0x813   :  { %v2182_v27 = vadd.f32 %v2181_v38, %v1856_v14 }
 0x814   :  { %v2219_v13 = vpop.f32.mrf.mxu0  ;;  %v2238_v50 = vpop.f32.mrf.mxu1 }
 0x815   :  { %v2201_v12 = vadd.f32 %v2200_v11, %v2182_v27 }
 0x817   :  { %v2220_v15 = vadd.f32 %v2219_v13, %v2201_v12 }
 0x819   :  { %v2239_v9 = vadd.f32 %v2238_v50, %v2220_v15  ;;  %v3930_v50 = vld [vmem:[#allocation2 + $0x180] sm:$0xff] }
 0x81a   :  { %v2183_v57 = vpop.f32.mrf.mxu2  ;;  %v2202_v22 = vpop.f32.mrf.mxu3 }
 0x81b   :  { %v2184_v20 = vadd.f32 %v2183_v57, %v1856_v14  ;;  %v3933_v14 = vld [vmem:[#allocation2 + $0x378] sm:$0xff] }
 0x81c   :  { %v2221_v32 = vpop.f32.mrf.mxu0  ;;  %v2240_v37 = vpop.f32.mrf.mxu1  ;;  %2659 = vmatpush.bf16.msrb.mxu3 %v3933_v14 }
 0x81d   :  { %v2203_v24 = vadd.f32 %v2202_v22, %v2184_v20 }
 0x81f   :  { %v2222_v35 = vadd.f32 %v2221_v32, %v2203_v24  ;;  %v3928_v32 = vld [vmem:[#allocation2 + $0x260] sm:$0xff] }
 0x820   :  { %2660 = vmatpush.bf16.msrb.mxu3 %v3932_v44 }
 0x821   :  { %v2241_v41 = vadd.f32 %v2240_v37, %v2222_v35  ;;  %v3946_v35 = vld [vmem:[#allocation2 + $0xe8] sm:$0xff]  ;;  %v3958_v37 = vld [vmem:[#allocation2 + $0x40] sm:$0xff] }
 0x822   :  { %v2252_v6 = vpop.f32.mrf.mxu2  ;;  %2700 = vmatpush.bf16.msrb.mxu1 %v3946_v35  ;;  %2715 = vmatpush.bf16.msra.mxu2 %v3958_v37 }
 0x823   :  { %v2253_v17 = vadd.f32 %v2252_v6, %v2234_v39 }
 0x824   :  { %2661 = vmatpush.bf16.msrb.mxu3 %v3931_v2 }
 0x828   :  { %2662 = vmatpush.bf16.msrb.mxu3 %v3930_v50 }
 0x82a   :  { %v2254_v4 = vpop.f32.mrf.mxu2 }
 0x82b   :  { %v2255_v42 = vadd.f32 %v2254_v4, %v2236_v40  ;;  %v3937_v40 = vld [vmem:[#allocation2 + $0x50] sm:$0xff] }
 0x82c   :  { %2663 = vmatpush.bf16.msrb.mxu3 %v3929_v36  ;;  %2682 = vmatpush.bf16.msrb.mxu0 %v3937_v40 }
 0x830   :  { %2664 = vmatpush.bf16.msrb.mxu3 %v3928_v32 }
 0x832   :  { %v2257_v10 = vpop.f32.mrf.mxu2 }
 0x833   :  { %v2258_v26 = vadd.f32 %v2257_v10, %v2239_v9 }
 0x83a   :  { %v2259_v1 = vpop.f32.mrf.mxu2 }
 0x83b   :  { %v2260_v53 = vadd.f32 %v2259_v1, %v2241_v41  ;;  %v3945_v41 = vld [vmem:[#allocation2 + $0x3d0] sm:$0xff]  ;;  %v3957_v1 = vld [vmem:[#allocation2 + $0x2b8] sm:$0xff] }
 0x83c   :  { %2701 = vmatpush.bf16.msrb.mxu1 %v3945_v41  ;;  %2716 = vmatpush.bf16.msra.mxu2 %v3957_v1 }
 0x83d   :  { %v4044_v48 = vpack.i.bf16 %v2260_v53, %v2255_v42  ;;  %v3936_v42 = vld [vmem:[#allocation2 + $0x360] sm:$0xff]  ;;  %v3944_v53 = vld [vmem:[#allocation2 + $0x190] sm:$0xff] }
 0x83e   :  { %2683 = vmatpush.bf16.msrb.mxu0 %v3936_v42 }
 0x83f   :  { %4045 = vrot.lane.b32.xlu0 %v4044_v48, %s4101_s0  ;;  %v3956_v48 = vld [vmem:[#allocation2 + $0x238] sm:$0xff] }
 0x840   :  { %2702 = vmatpush.bf16.msrb.mxu1 %v3944_v53  ;;  %2717 = vmatpush.bf16.msra.mxu2 %v3956_v48 }
 0x8b1   :  { %v4046_v51 = vpop.permute.xlu0 %4045 }
 0x8b2   :  { %v4048_v7 = vunpack.i.h.bf16 %v4046_v51  ;;  %v4047_v52 = vunpack.i.l.bf16 %v4046_v51  ;;  %v3963_v51 = vld [vmem:[#allocation2 + $0x188] sm:$0xff] }
 0x8b3   :  { %2737 = vmatpush.bf16.msra.mxu3 %v3963_v51 }
 0x8b4   :  { %v2270_v54 = vsel %vm732_vm0, %v2253_v17, %v4047_v52  ;;  %v2271_v55 = vsel %vm732_vm0, %v2258_v26, %v4048_v7  ;;  %v3955_v7 = vld [vmem:[#allocation2 + $0x428] sm:$0xff]  ;;  %v3962_v52 = vld [vmem:[#allocation2 + $0x58] sm:$0xff] }
 0x8b5   :  { %v2272_v49 = vmax.f32 %v2270_v54, 0.0  ;;  %v2273_v29 = vmax.f32 %v2271_v55, 0.0  ;;  %2718 = vmatpush.bf16.msra.mxu2 %v3955_v7  ;;  %v3954_v54 = vld [vmem:[#allocation2 + $0x80] sm:$0xff]  ;;  %v3953_v55 = vld [vmem:[#allocation2 + $0x430] sm:$0xff] }
 0x8b7   :  { %v4049_v33 = vpack.i.bf16 %v2273_v29, %v2272_v49  ;;  %2738 = vmatpush.bf16.msra.mxu3 %v3962_v52  ;;  %v3952_v49 = vld [vmem:[#allocation2 + $0x388] sm:$0xff]  ;;  %v3961_v29 = vld [vmem:[#allocation2 + $0x98] sm:$0xff] }
 0x8b9   :  { %4050 = vrot.lane.b32.xlu1 %v4049_v33, %s4101_s0  ;;  %2719 = vmatpush.bf16.msra.mxu2 %v3954_v54 }
 0x8bb   :  { %2739 = vmatpush.bf16.msra.mxu3 %v3961_v29 }
 0x8bd   :  { %2720 = vmatpush.bf16.msra.mxu2 %v3953_v55 }
 0x8bf   :  { %2740 = vmatpush.bf16.msra.mxu3 %v3960_v59 }
 0x8c1   :  { %2721 = vmatpush.bf16.msra.mxu2 %v3952_v49 }
 0x92b   :  { %v4051_v0 = vpop.permute.xlu1 %4050 }
 0x92c   :  { %v5107_v39 = vunpack.i.h.bf16 %v4051_v0  ;;  %v4052_v45 = vunpack.i.l.bf16 %v4051_v0 }
 0x92e   :  { %v5111_v8 = vsel %vm732_vm0, %v4052_v45, %v5107_v39  ;;  %v5114_v38 = vsel %vm732_vm0, 0.0, %v4052_v45  ;;  %v2358_v27 = vsel %vm732_vm0, %v5107_v39, 0.0 }
 0x92f   :  { %v2363_v11 = vrot.slane %v2358_v27, 6  ;;  %v2370_v12 = vrot.slane %v5114_v38, 2  ;;  %v2371_v13 = vrot.slane %v5111_v8, 2  ;;  %v2361_v15 = vrot.slane %v5114_v38, 6 }
 0x930   :  { %v2362_v9 = vrot.slane %v5111_v8, 6  ;;  %v2372_v24 = vrot.slane %v2358_v27, 2  ;;  %v4064_v26 = vpack.i.bf16 %v5111_v8, %v5114_v38 }
 0x931   :  { %v5123_v57 = vsel %vm785_vm1, 0.0, %v2363_v11  ;;  %v2376_v6 = vsel %vm791_vm3, %v2370_v12, 0.0  ;;  %v5131_v17 = vsel %vm791_vm3, %v2371_v13, 0.0  ;;  %v2367_v4 = vsel %vm785_vm1, 0.0, %v2361_v15 }
 0x932   :  { %2413 = vrot.lane.b32.xlu0 %v5123_v57, %s4101_s0  ;;  %v4059_v46 = vpack.i.bf16 %v5131_v17, %v2376_v6  ;;  %v2368_v20 = vsel %vm785_vm1, 0.0, %v2362_v9  ;;  %v5145_v10 = vsel %vm791_vm3, %v2372_v24, 0.0 }
 0x933   :  { %v4054_v22 = vpack.i.bf16 %v2368_v20, %v2367_v4 }
 0x934   :  { %4060 = vrot.lane.b32.xlu1 %v4059_v46, %s4101_s0 }
 0x935   :  { %4055 = vrot.lane.b32.xlu2 %v4054_v22, %s4101_s0 }
 0x93a   :  { %2419 = vrot.lane.b32.xlu0 %v5145_v10, %s4101_s0 }
 0x93c   :  { %2406 = vrot.lane.b32.xlu1 %v2358_v27, %s4101_s0 }
 0x93d   :  { %4065 = vrot.lane.b32.xlu2 %v4064_v26, %s4101_s0 }
 0x98f   :  { %v4056_v33 = vpop.permute.xlu2 %4055 }
 0x990   :  { %v4058_v56 = vunpack.i.h.bf16 %v4056_v33  ;;  %v4057_v58 = vunpack.i.l.bf16 %v4056_v33 }
 0x992   :  { %v2393_v25 = vsel %vm732_vm0, %v4057_v58, %v4058_v56  ;;  %v2405_v44 = vsel %vm732_vm0, %v4058_v56, %v5114_v38 }
 0x993   :  { %v3720_v60 = vpack.c.bf16 %v2393_v25, %v2361_v15 }
 0x995   :  { %3721 = vmatmul.msk.bf16.vlgmr.msrb.gmra.mxu3 %vm4846_vm6, %v3720_v60 }
 0x997   :  { %v4066_v23 = vpop.permute.xlu2 %4065 }
 0x998   :  { %v4068_v61 = vunpack.i.h.bf16 %v4066_v23  ;;  %v4067_v14 = vunpack.i.l.bf16 %v4066_v23 }
 0x99a   :  { %v2383_v21 = vsel %vm732_vm0, %v4067_v14, %v4068_v61  ;;  %v2386_v31 = vsel %vm732_vm0, %v2368_v20, %v4067_v14  ;;  %v2411_v6 = vsel %vm732_vm0, %v5123_v57, %v4068_v61 }
 0x99b   :  { %v2426_v62 = vpack.c.bf16 %v2405_v44, %v2386_v31  ;;  %v2427_v63 = vpack.c.bf16 %v5111_v8, %v2383_v21 }
 0x99d   :  { %2684 = vmatmul.bf16.vlgmr.msrb.gmra.mxu0 %v2426_v62  ;;  %2703 = vmatmul.bf16.vlgmr.msrb.gmra.mxu1 %v2427_v63 }
 0x9a4   :  { %v2414_v0 = vpop.permute.xlu0 %2413 }
 0x9a5   :  { %v2415_v2 = vsel %vm732_vm0, %v4058_v56, %v2414_v0  ;;  %v2424_v11 = vsel %vm732_vm0, %v2414_v0, %v5111_v8 }
 0x9a6   :  { %v3724_v45 = vpack.c.bf16 %v2415_v2, %v2362_v9  ;;  %v4061_v3 = vpop.permute.xlu1 %4060  ;;  %v2431_v4 = vpack.c.bf16 %v2424_v11, %v2411_v6  ;;  %v3966_v6 = vld [vmem:[#allocation3 + $0x10] sm:$0xff] }
 0x9a7   :  { %v4063_v5 = vunpack.i.h.bf16 %v4061_v3  ;;  %v4062_v27 = vunpack.i.l.bf16 %v4061_v3 }
 0x9a8   :  { %3725 = vmatmul.msk.bf16.gmra.mxu3 %vm4846_vm6, %v3724_v45 }
 0x9a9   :  { %v2402_v15 = vsel %vm732_vm0, %v4062_v27, %v4063_v5  ;;  %v2429_v38 = vpack.c.bf16 %v4063_v5, %v5131_v17 }
 0x9aa   :  { %v3730_v50 = vpack.c.bf16 %v2402_v15, %v2370_v12 }
 0x9ac   :  { %3731 = vmatmul.msk.bf16.vlgmr.msra.gmra.mxu2 %vm4872_vm7, %v3730_v50  ;;  %v2420_v30 = vpop.permute.xlu0 %2419 }
 0x9ad   :  { %2689 = vmatmul.bf16.gmra.mxu0 %v2431_v4  ;;  %v2421_v12 = vsel %vm732_vm0, %v4063_v5, %v2420_v30  ;;  %v2434_v22 = vpack.c.bf16 %v2420_v30, %v5145_v10  ;;  %v3967_v5 = vld [vmem:[#allocation3 + $0x48] sm:$0xff]  ;;  %v3972_v30 = vld [vmem:[#allocation3 + $0x40] sm:$0xff] }
 0x9ae   :  { %v2407_v9 = vpop.permute.xlu1 %2406  ;;  %v3733_v57 = vpack.c.bf16 %v2421_v12, %v2371_v13  ;;  %2829 = vmatpush.bf16.msra.mxu0 %v3967_v5  ;;  %v3965_v4 = vld [vmem:[#allocation3 + $0x8] sm:$0xff] }
 0x9af   :  { %v2408_v46 = vsel %vm732_vm0, %v4068_v61, %v2407_v9  ;;  %v3974_v9 = vld [vmem:[#allocation3 + $0x38] sm:$0xff] }
 0x9b0   :  { %v3727_v20 = vpack.c.bf16 %v5107_v39, %v2408_v46  ;;  %v3973_v46 = vld [vmem:[#allocation3 + $0x20] sm:$0xff] }
 0x9b2   :  { %3728 = vmatmul.msk.bf16.gmra.mxu1 %vm4883_vm8, %v3727_v20  ;;  %2830 = vmatpush.bf16.msra.mxu0 %v3966_v6 }
 0x9b6   :  { %2831 = vmatpush.bf16.msra.mxu0 %v3965_v4 }
 0x9b8   :  { %3735 = vmatmul.msk.bf16.vlgmr.msra.gmra.mxu3 %vm732_vm0, %v2429_v38 }
 0x9ba   :  { %2832 = vmatpush.bf16.msra.mxu0 %v3964_v16 }
 0x9bc   :  { %3734 = vmatmul.msk.bf16.gmra.mxu2 %vm4872_vm7, %v3733_v57 }
 0x9c8   :  { %3736 = vmatmul.msk.bf16.gmra.mxu3 %vm732_vm0, %v2434_v22  ;;  %v3970_v22 = vld [vmem:[#allocation3 + $0x18] sm:$0xff] }
 0xa18   :  { %v2666_v39 = vpop.f32.mrf.mxu3 }
 0xa19   :  { %v2667_v17 = vadd.f32 %v2666_v39, %v2346_v28 }
 0xa1a   :  { %v2685_v36 = vpop.f32.mrf.mxu0  ;;  %v2704_v26 = vpop.f32.mrf.mxu1 }
 0xa1b   :  { %v2686_v24 = vadd.f32 %v2685_v36, %v2667_v17  ;;  %v3969_v36 = vld [vmem:[#allocation3] sm:$0xff] }
 0xa1d   :  { %v2705_v32 = vadd.f32 %v2704_v26, %v2686_v24 }
 0xa20   :  { %v2668_v34 = vpop.f32.mrf.mxu3 }
 0xa21   :  { %v2669_v51 = vadd.f32 %v2668_v34, %v2346_v28 }
 0xa22   :  { %v2687_v8 = vpop.f32.mrf.mxu0  ;;  %v2706_v13 = vpop.f32.mrf.mxu1 }
 0xa23   :  { %v2688_v52 = vadd.f32 %v2687_v8, %v2669_v51 }
 0xa25   :  { %v2707_v49 = vadd.f32 %v2706_v13, %v2688_v52  ;;  %v3968_v13 = vld [vmem:[#allocation3 + $0x30] sm:$0xff] }
 0xa2a   :  { %v2690_v37 = vpop.f32.mrf.mxu0 }
 0xa2b   :  { %v2671_v35 = vpop.f32.mrf.mxu3 }
 0xa2c   :  { %v2672_v47 = vadd.f32 %v2671_v35, %v2346_v28  ;;  %v2797_v35 = vld [vmem:[%s5215_s2 + $0x5] ss:$0 sm:$0xff] }
 0xa2e   :  { %v2691_v40 = vadd.f32 %v2690_v37, %v2672_v47 }
 0xa2f   :  { %v2709_v10 = vpop.f32.mrf.mxu1  ;;  %v2723_v41 = vpop.f32.mrf.mxu2 }
 0xa30   :  { %v2710_v1 = vadd.f32 %v2709_v10, %v2691_v40  ;;  %v2724_v42 = vadd.f32 %v2723_v41, %v2705_v32 }
 0xa32   :  { %v2692_v25 = vpop.f32.mrf.mxu0 }
 0xa33   :  { %v2673_v53 = vpop.f32.mrf.mxu3 }
 0xa34   :  { %v2674_v59 = vadd.f32 %v2673_v53, %v2346_v28 }
 0xa36   :  { %v2693_v23 = vadd.f32 %v2692_v25, %v2674_v59 }
 0xa37   :  { %v2725_v48 = vpop.f32.mrf.mxu2  ;;  %v2711_v14 = vpop.f32.mrf.mxu1 }
 0xa38   :  { %v2726_v33 = vadd.f32 %v2725_v48, %v2707_v49  ;;  %v2712_v31 = vadd.f32 %v2711_v14, %v2693_v23 }
 0xa3b   :  { %v2742_v7 = vpop.f32.mrf.mxu3 }
 0xa3c   :  { %v2743_v54 = vadd.f32 %v2742_v7, %v2724_v42 }
 0xa3f   :  { %v2728_v55 = vpop.f32.mrf.mxu2 }
 0xa40   :  { %v2729_v29 = vadd.f32 %v2728_v55, %v2710_v1  ;;  %v2856_v1 = vld [vmem:[%s5215_s2 + $0x6] ss:$0 sm:$0xff] }
 0xa43   :  { %v2744_v56 = vpop.f32.mrf.mxu3 }
 0xa44   :  { %v2745_v58 = vadd.f32 %v2744_v56, %v2726_v33 }
 0xa46   :  { %2753 = vrot.lane.b32.xlu2 %v2745_v58, %s4101_s0 }
 0xa47   :  { %v2730_v21 = vpop.f32.mrf.mxu2 }
 0xa48   :  { %v2731_v44 = vadd.f32 %v2730_v21, %v2712_v31 }
 0xa4b   :  { %v2747_v60 = vpop.f32.mrf.mxu3 }
 0xa4c   :  { %v2748_v61 = vadd.f32 %v2747_v60, %v2729_v29 }
 0xa53   :  { %v2749_v62 = vpop.f32.mrf.mxu3 }
 0xa54   :  { %v2750_v63 = vadd.f32 %v2749_v62, %v2731_v44 }
 0xa56   :  { %2757 = vrot.lane.b32.xlu0 %v2750_v63, %s4101_s0 }
 0xaa0   :  { %v2754_v0 = vpop.permute.xlu2 %2753 }
 0xaa1   :  { %v2760_v2 = vsel %vm732_vm0, %v2743_v54, %v2754_v0 }
 0xaa2   :  { %v2762_v45 = vadd.f32 %v2760_v2, %v1782_v19  ;;  %v3975_v19 = vld [vmem:[#allocation3 + $0x28] sm:$0xff] }
 0xaa3   :  { %2905 = vmatpush.bf16.msra.mxu1 %v3975_v19 }
 0xaa4   :  { %v2764_v3 = vmax.f32 %v2762_v45, 0.0 }
 0xaa6   :  { %2767 = vrot.lane.b32.xlu1 %v2764_v3, %s4101_s0 }
 0xaa7   :  { %2906 = vmatpush.bf16.msra.mxu1 %v3974_v9 }
 0xaab   :  { %2907 = vmatpush.bf16.msra.mxu1 %v3973_v46 }
 0xaaf   :  { %2908 = vmatpush.bf16.msra.mxu1 %v3972_v30 }
 0xab3   :  { %2909 = vmatpush.bf16.msra.mxu1 %v3971_v18 }
 0xab7   :  { %2910 = vmatpush.bf16.msra.mxu1 %v3970_v22 }
 0xabb   :  { %2911 = vmatpush.bf16.msra.mxu1 %v3969_v36 }
 0xabf   :  { %2912 = vmatpush.bf16.msra.mxu1 %v3968_v13 }
 0xac8   :  { %v2758_v27 = vpop.permute.xlu0 %2757 }
 0xac9   :  { %v2761_v11 = vsel %vm732_vm0, %v2748_v61, %v2758_v27 }
 0xaca   :  { %v2763_v15 = vadd.f32 %v2761_v11, %v1783_v43 }
 0xacc   :  { %v2765_v50 = vmax.f32 %v2763_v15, 0.0 }
 0xace   :  { %2773 = vrot.lane.b32.xlu2 %v2765_v50, %s4101_s0 }
 0xb18   :  { %v2768_v20 = vpop.permute.xlu1 %2767 }
 0xb19   :  { %v2770_v38 = vadd.f32 %v2768_v20, %v2764_v3 }
 0xb1b   :  { %v2771_v43 = vadd.f32 %v2770_v38, %v2765_v50 }
 0xb28   :  { %v2774_v12 = vpop.permute.xlu2 %2773 }
 0xb29   :  { %v2776_v57 = vadd.f32 %v2774_v12, %v2771_v43 }
 0xb2b   :  { %v2778_v28 = vrot.slane %v2776_v57, 2  ;;  %v2781_v17 = vrot.slane %v2776_v57, 4  ;;  %v2784_v24 = vrot.slane %v2776_v57, 6 }
 0xb2d   :  { %v2780_v39 = vadd.f32 %v2778_v28, %v2776_v57 }
 0xb2f   :  { %v2783_v26 = vadd.f32 %v2781_v17, %v2780_v39 }
 0xb31   :  { %v2786_v32 = vadd.f32 %v2784_v24, %v2783_v26 }
 0xb33   :  { %v2787_v34 = vmul.f32 0.0625, %v2786_v32 }
 0xb35   :  { %v2788_v8 = vpack.c.bf16 %v2787_v34, %v2787_v34 }
 0xb37   :  { %3753 = vmatmul.msk.bf16.vlgmr.msra.gmra.mxu0 %vm732_vm0, %v2788_v8 }
 0xbb4   :  { %v2834_v47 = vpop.f32.mrf.mxu0 }
 0xbb5   :  { %v2835_v37 = vadd.f32 %v2834_v47, %v2797_v35 }
 0xbb7   :  { %v2838_v40 = vmax.f32 %v2835_v37, 0.0 }
 0xbb9   :  { %v2839_v10 = vpack.c.bf16 %v2838_v40, %v2838_v40 }
 0xbbb   :  { %2913 = vmatmul.bf16.vlgmr.msra.gmra.mxu1 %v2839_v10 }
 0xbbc   :  { %v2836_v41 = vpop.f32.mrf.mxu0 }
 0xc38   :  { %v2914_v42 = vpop.f32.mrf.mxu1 }
 0xc39   :  { %v2915_v53 = vadd.f32 %v2914_v42, %v2856_v1 }
 0xc3b   :  { %4069 = vtanh.f32 %v2915_v53 }
 0xc40   :  { %v2916_v48 = vpop.f32.mrf.mxu1 }
 0xc41   :  { %v4070_v51 = vpop.eup %4069 }
 0xc42   :  { %2919 = vst [vmem:[#allocation5] sm:$0x3] %v4070_v51 }
 0xc43   :  { %2930 = dma.vmem_to_hbm [thread:$0]  %s2926_s29, 32, %s2928_s7, [#allocation6]  }
 0xc44   :  { %4099 = dma.done.wait [#allocation6], 32  }
 0xc45   :  { %4100 = vsyncadd [#allocation6], 4294967264 }
 0xc46   :  { %2935 = vsyncpa [#allocation6], 1 }
 0xc47   :  { %2936 = vsyncmov [#allocation4] }
 0xc4a   :  { %s2937_s2 = vpop.sfrf %2936 }
 0xc4b   :  { %p3786_p0 = scmp.ne.s32.totalorder %s2937_s2, 0 }
 0xc4d   :  { %2941 = shalt.err (%p3786_p0)  }
 0xc4e   :  { %2943 = vsyncmov [#allocation4 + $0x1] }
 0xc51   :  { %s2944_s8 = vpop.sfrf %2943 }
 0xc52   :  { %p3787_p1 = scmp.ne.s32.totalorder %s2944_s8, 0 }
 0xc54   :  { %2948 = shalt.err (%p3787_p1)  }

</bundles_post_ra>
